<compile_context>
chip_gen: v6e
topology: v6e:2x2x1
jax: 0.10.0
libtpu: 0.0.40
codegen_flags: <defaults>
</compile_context>

<pallas_src>
import functools
import math

import jax
import jax.numpy as jnp
from jax.experimental import pallas as pl
from jax.experimental.pallas import tpu as pltpu

IGNORED_LABEL_ID = -1
_NEG = -1.0e30          # "minus infinity" that stays finite through exp/max


def _round_up(n, m):
    return ((n + m - 1) // m) * m


def _vmem_capacity_bytes(default=128 * 1024 * 1024):
    """Per-core VMEM capacity; conservative fallback if the query fails."""
    try:
        return int(pltpu.get_tpu_info().vmem_capacity_bytes)
    except Exception:
        return default


def _select_tile_l(max_l, e_p, budget_bytes, b_hint=512):
    """Largest power-of-two class tile whose streaming footprint fits budget."""
    l_ceil = _round_up(max(max_l, 1), 128)
    tile = 128
    while tile * 2 <= min(l_ceil, 4096):
        nxt = tile * 2
        need = (2 * e_p * nxt * 2        # double-buffered bf16 class-center tile
                + 2 * nxt * 4            # double-buffered inv_wn
                + b_hint * nxt * 4)      # f32 cosine block
        if need > budget_bytes:
            break
        tile = nxt
    return tile


def _estimate_vmem_bytes(b_blk, din_p, e_p, tile_l):
    stream = (2 * din_p * e_p * 2        # wp (bf16, double-buffered)
              + 2 * 8 * e_p * 4          # bp
              + 2 * e_p * tile_l * 2     # wa (bf16, double-buffered)
              + 2 * 8 * tile_l * 4       # inv_wn
              + 2 * b_blk * 128 * 4      # stats out
              + 2 * b_blk * 128 * 4)     # dcls out
    resident = (b_blk * din_p * 2 + 2 * b_blk * 8 * 4
                + din_p * 128 * 2 + 8 * 128 * 4
                + b_blk * e_p * 2 + b_blk * 128 * 4 + 4 * b_blk * 8 * 4)
    temps = 2 * b_blk * tile_l * 4       # f32 cosine / mask temporaries
    return stream + resident + temps


# ----------------------------------------------------------------------------
# Fused kernel.  grid = (batch_block, flattened (domain, class_tile) step).
# ----------------------------------------------------------------------------
def _md_arcface_kernel(nl_ref, sdom_ref, stile_ref, slast_ref,      # prefetch (SMEM)
                       x_ref, lab_ref, dom_ref,                      # batch-resident
                       wp_ref, bp_ref, wa_ref, invw_ref,             # per-domain weights
                       wd_ref, bd_ref,                               # domain classifier
                       stats_ref, dcls_ref,                          # outputs
                       emb_sc, m_sc, l_sc, tgt_sc, dce_sc, top5_sc,  # scratch
                       *, s, cos_m, sin_m, th, mm, tile_l, num_domains):
    i = pl.program_id(1)
    d = sdom_ref[i]                      # domain handled at this step
    t = stile_ref[i]                     # class-tile index within that domain
    nl = nl_ref[d]                       # number of real classes for domain d
    is_first = t == 0
    is_last = slast_ref[i] == 1

    # per-domain label masking (torch: where(domain_ids == d, labels, -1))
    this_lab = jnp.where(dom_ref[...] == d, lab_ref[...], IGNORED_LABEL_ID)

    # ---- first tile of a domain: init state + per-domain projection --------
    @pl.when(is_first)
    def _init():
        m_sc[...] = jnp.full(m_sc.shape, _NEG, jnp.float32)
        l_sc[...] = jnp.zeros(l_sc.shape, jnp.float32)
        tgt_sc[...] = jnp.zeros(tgt_sc.shape, jnp.float32)
        top5_sc[...] = jnp.full(top5_sc.shape, _NEG, jnp.float32)

        x = x_ref[...]                                                   # bf16 [Bb, Din]
        emb = (jnp.dot(x, wp_ref[...], preferred_element_type=jnp.float32)
               + bp_ref[...])                                            # f32 [Bb, E]
        inv_n = jax.lax.rsqrt(jnp.sum(emb * emb, axis=-1, keepdims=True) + 1e-24)
        emb_sc[...] = (emb * inv_n).astype(jnp.bfloat16)                 # L2-normed

    # ---- tiny domain-classification head: once per batch block -------------
    @pl.when(jnp.logical_and(is_first, d == 0))
    def _domain_head():
        x = x_ref[...]
        dlog = (jnp.dot(x, wd_ref[...], preferred_element_type=jnp.float32)
                + bd_ref[...])                                           # [Bb, 128]
        lane = jax.lax.broadcasted_iota(jnp.int32, (1, dlog.shape[-1]), 1)
        dvalid = lane < num_domains
        dlog_m = jnp.where(dvalid, dlog, _NEG)
        dmax = jnp.max(dlog_m, axis=-1, keepdims=True)
        dsum = jnp.sum(jnp.exp(dlog_m - dmax), axis=-1, keepdims=True)
        dtgt = jnp.sum(jnp.where(lane == dom_ref[...], dlog_m, 0.0),
                       axis=-1, keepdims=True)
        dce_sc[...] = dmax + jnp.log(dsum) - dtgt                        # [Bb, 1]
        dcls_ref[...] = jnp.where(dvalid, dlog, 0.0)                     # lane-dense

    # ---- one class tile: online LSE (target masked), target cos, top-5 -----
    # class centers are pre-normalized via the precomputed per-column inv-norm
    cos = (jnp.dot(emb_sc[...], wa_ref[...],
                   preferred_element_type=jnp.float32) * invw_ref[...])  # [Bb, T]

    lane_t = jax.lax.broadcasted_iota(jnp.int32, (1, tile_l), 1)         # (1, T)
    cls_id = lane_t + t * tile_l                                         # (1, T)
    valid_cls = cls_id < nl                                              # (1, T)
    eq = cls_id == this_lab                                              # (Bb, T)
    onehot = jnp.logical_and(valid_cls, eq)

    # online log-sum-exp over s*cosine with the target column masked out;
    # the margin logit is added exactly at finalize (no cancellation).
    logit = jnp.where(jnp.logical_and(valid_cls, jnp.logical_not(eq)),
                      s * cos, _NEG)
    m_new = jnp.maximum(m_sc[...], jnp.max(logit, axis=-1, keepdims=True))
    alpha = jnp.exp(m_sc[...] - m_new)
    l_sc[...] = alpha * l_sc[...] + jnp.sum(jnp.exp(logit - m_new),
                                            axis=-1, keepdims=True)
    m_sc[...] = m_new

    # target-class cosine (exactly one tile contributes per valid row)
    tgt_sc[...] = tgt_sc[...] + jnp.sum(jnp.where(onehot, cos, 0.0),
                                        axis=-1, keepdims=True)

    # running top-5 cosines (exact float ties collapse; metric-only effect)
    work = jnp.where(valid_cls, cos, _NEG)
    prev = top5_sc[...]
    lane128 = jax.lax.broadcasted_iota(jnp.int32, (1, prev.shape[-1]), 1)
    new_top = jnp.full_like(prev, _NEG)
    for k in range(5):
        mk = jnp.maximum(jnp.max(work, axis=-1, keepdims=True),
                         jnp.max(prev, axis=-1, keepdims=True))
        new_top = jnp.where(lane128 == k, mk, new_top)
        work = jnp.where(work == mk, _NEG, work)
        prev = jnp.where(prev == mk, _NEG, prev)
    top5_sc[...] = new_top

    # ---- last tile of a domain: ArcFace margin on the target column only ---
    @pl.when(is_last)
    def _finalize():
        valid = this_lab >= 0                                            # [Bb, 1]
        c_t = tgt_sc[...]
        sin_t = jnp.sqrt(jnp.clip(1.0 - c_t * c_t, 0.0, 1.0))
        phi = c_t * cos_m - sin_t * sin_m
        phi = jnp.where(c_t > th, phi, c_t - mm)

        m_i = m_sc[...]
        l_corr = l_sc[...] + jnp.exp(s * phi - m_i)     # target added here only
        ce = m_i + jnp.log(l_corr) - s * phi
        ce = jnp.where(valid, ce, 0.0)                  # zero ignored samples

        n_gt = jnp.sum((top5_sc[...] > c_t).astype(jnp.float32),
                       axis=-1, keepdims=True)
        hit = jnp.where(valid, (n_gt < 5.0).astype(jnp.float32), 0.0)
        validf = valid.astype(jnp.float32)

        lane = jax.lax.broadcasted_iota(jnp.int32, (1, stats_ref.shape[-1]), 1)
        stats_ref[...] = jnp.where(
            lane == 0, ce,
            jnp.where(lane == 1, hit,
                      jnp.where(lane == 2, validf,
                                jnp.where(lane == 3, dce_sc[...], 0.0))))


# ----------------------------------------------------------------------------
# pallas_call wrapper
# ----------------------------------------------------------------------------
def _fused_forward_call(xp, lab2d, dom2d, packed, *, num_bb,
                        arcface_scale, margin, vmem_limit_bytes):
    dims = packed["dims"]
    nd, tile_l, e_p = dims["nd"], dims["tile_l"], dims["e_p"]
    total_steps = dims["total_steps"]
    b_pad, din_p = xp.shape
    b_blk = b_pad // num_bb

    kern = functools.partial(
        _md_arcface_kernel,
        s=float(arcface_scale),
        cos_m=math.cos(margin), sin_m=math.sin(margin),
        th=math.cos(math.pi - margin), mm=math.sin(math.pi - margin) * margin,
        tile_l=tile_l, num_domains=nd)

    grid_spec = pltpu.PrefetchScalarGridSpec(
        num_scalar_prefetch=4,
        grid=(num_bb, total_steps),
        in_specs=[
            pl.BlockSpec((b_blk, din_p), lambda bb, i, nl, sd, st, sl: (bb, 0)),     # x
            pl.BlockSpec((b_blk, 1), lambda bb, i, nl, sd, st, sl: (bb, 0)),         # labels
            pl.BlockSpec((b_blk, 1), lambda bb, i, nl, sd, st, sl: (bb, 0)),         # domain ids
            pl.BlockSpec((None, din_p, e_p),
                         lambda bb, i, nl, sd, st, sl: (sd[i], 0, 0)),               # proj W^T
            pl.BlockSpec((None, 1, e_p),
                         lambda bb, i, nl, sd, st, sl: (sd[i], 0, 0)),               # proj bias
            pl.BlockSpec((None, e_p, tile_l),
                         lambda bb, i, nl, sd, st, sl: (sd[i], 0, st[i])),           # arc W^T tile
            pl.BlockSpec((None, 1, tile_l),
                         lambda bb, i, nl, sd, st, sl: (sd[i], 0, st[i])),           # inv col norm
            pl.BlockSpec((din_p, 128), lambda bb, i, nl, sd, st, sl: (0, 0)),        # dom-cls W^T
            pl.BlockSpec((1, 128), lambda bb, i, nl, sd, st, sl: (0, 0)),            # dom-cls bias
        ],
        out_specs=[
            pl.BlockSpec((None, b_blk, 128),
                         lambda bb, i, nl, sd, st, sl: (sd[i], bb, 0)),              # packed stats
            pl.BlockSpec((b_blk, 128), lambda bb, i, nl, sd, st, sl: (bb, 0)),       # dom-cls logits
        ],
        scratch_shapes=[
            pltpu.VMEM((b_blk, e_p), jnp.bfloat16),   # normalized embedding
            pltpu.VMEM((b_blk, 1), jnp.float32),      # running max
            pltpu.VMEM((b_blk, 1), jnp.float32),      # running sum-exp
            pltpu.VMEM((b_blk, 1), jnp.float32),      # target cosine
            pltpu.VMEM((b_blk, 1), jnp.float32),      # per-sample domain CE
            pltpu.VMEM((b_blk, 128), jnp.float32),    # running top-5 cosines
        ],
    )
    return pl.pallas_call(
        kern,
        grid_spec=grid_spec,
        out_shape=(jax.ShapeDtypeStruct((nd, b_pad, 128), jnp.float32),
                   jax.ShapeDtypeStruct((b_pad, 128), jnp.float32)),
        compiler_params=pltpu.CompilerParams(
            dimension_semantics=("parallel", "arbitrary"),
            vmem_limit_bytes=vmem_limit_bytes),
    )(packed["num_labels"], packed["step_dom"], packed["step_tile"],
      packed["step_last"],
      xp, lab2d, dom2d,
      packed["wp_t"], packed["bp"], packed["wa_t"], packed["inv_wn"],
      packed["wd_t"], packed["bd"])


# ----------------------------------------------------------------------------
# Parameter construction / packing (wrapper-side layout plumbing, plain JAX)
# ----------------------------------------------------------------------------
def build_params(key, backbone_dim, domain_to_num_labels, embed_dim):
    """Torch-convention parameters ([out, in] Linear weights), synthetic."""
    num_domains = len(domain_to_num_labels)
    embed_dim_d = embed_dim - num_domains          # embed_mode='separate'
    params = {"domains": {}}
    keys = jax.random.split(key, 2 + 3 * num_domains)
    params["domain_cls_w"] = (jax.random.normal(keys[0], (num_domains, backbone_dim),
                                                jnp.float32)
                              / math.sqrt(backbone_dim))
    params["domain_cls_b"] = jax.random.normal(keys[1], (1, num_domains),
                                               jnp.float32) * 0.01
    for i, (name, num_labels) in enumerate(domain_to_num_labels.items()):
        kw, kb, ka = keys[2 + 3 * i: 5 + 3 * i]
        params["domains"][name] = {
            "proj_w": jax.random.normal(kw, (embed_dim_d, backbone_dim),
                                        jnp.float32) / math.sqrt(backbone_dim),
            "proj_b": jax.random.normal(kb, (1, embed_dim_d), jnp.float32) * 0.01,
            # ArcMarginProduct_subcenter weight, k = num_sub_centers = 1
            "arc_w": jax.random.normal(ka, (num_labels, embed_dim_d),
                                       jnp.float32) / math.sqrt(embed_dim_d),
        }
    return params, embed_dim_d


def pack_params(params, domain_to_num_labels, *, tile_l=None):
    """Pre-transpose to [in, out], lane-pad to 128, stack per-domain, cast the
    big class-center stream to bf16, precompute per-column inverse norms and
    the flattened (domain, tile) step tables."""
    domain_names = list(domain_to_num_labels.keys())
    num_labels = [int(domain_to_num_labels[n]) for n in domain_names]
    nd = len(domain_names)
    assert nd <= 128, "domain classifier packed into a single 128-lane block"
    # TODO(synk): torch skips domains with num_labels == 1 (no projection /
    #             arcface head); this fused kernel requires >= 2 classes/domain.
    assert all(n >= 2 for n in num_labels)

    p0 = params["domains"][domain_names[0]]
    e, din = p0["proj_w"].shape
    max_l = max(num_labels)
    din_p = _round_up(din, 128)
    e_p = _round_up(e, 128)
    if tile_l is None:
        cap = _vmem_capacity_bytes()
        tile_l = _select_tile_l(max_l, e_p,
                                budget_bytes=min(cap, 128 << 20) // 6)
    l_p = _round_up(max_l, tile_l)

    wp_t = jnp.zeros((nd, din_p, e_p), jnp.float32)
    bpad = jnp.zeros((nd, 1, e_p), jnp.float32)
    wa_t = jnp.zeros((nd, e_p, l_p), jnp.float32)
    for i, name in enumerate(domain_names):
        p = params["domains"][name]
        wp_t = wp_t.at[i, :din, :e].set(p["proj_w"].T)
        bpad = bpad.at[i, 0, :e].set(p["proj_b"][0])
        wa_t = wa_t.at[i, :e, :num_labels[i]].set(p["arc_w"].T)
    wd_t = jnp.zeros((din_p, 128), jnp.float32).at[:din, :nd].set(
        params["domain_cls_w"].T)
    bd = jnp.zeros((1, 128), jnp.float32).at[0, :nd].set(params["domain_cls_b"][0])

    wa_bf16 = wa_t.astype(jnp.bfloat16)
    # per-column inverse norm of the *bf16-cast* class centers (what the MXU
    # actually sees), so semantics match in-kernel normalization exactly.
    inv_wn = jax.lax.rsqrt(
        jnp.sum(jnp.square(wa_bf16.astype(jnp.float32)), axis=1, keepdims=True)
        + 1e-24)                                                 # [nd, 1, l_p]

    # flattened grid: one step per real (domain, class_tile) pair
    step_dom, step_tile, step_last = [], [], []
    for d_idx, nl in enumerate(num_labels):
        nt = -(-nl // tile_l)
        for t_idx in range(nt):
            step_dom.append(d_idx)
            step_tile.append(t_idx)
            step_last.append(1 if t_idx == nt - 1 else 0)

    return {
        "wp_t": wp_t.astype(jnp.bfloat16),       # bf16 projection weights
        "bp": bpad,                              # f32 bias
        "wa_t": wa_bf16,                         # bf16 class centers (dominant stream)
        "inv_wn": inv_wn,                        # precomputed column inv-norms
        "wd_t": wd_t.astype(jnp.bfloat16),
        "bd": bd,
        "num_labels": jnp.asarray(num_labels, jnp.int32),
        "step_dom": jnp.asarray(step_dom, jnp.int32),
        "step_tile": jnp.asarray(step_tile, jnp.int32),
        "step_last": jnp.asarray(step_last, jnp.int32),
        "dims": {"nd": nd, "din": din, "din_p": din_p, "e": e, "e_p": e_p,
                 "l_p": l_p, "tile_l": tile_l, "total_steps": len(step_dom)},
    }


# ----------------------------------------------------------------------------
# MultiDomainArcFace forward (embed_mode='separate', labels given, no teacher)
# ----------------------------------------------------------------------------
def multi_domain_arcface_forward(x, labels, label_domain_ids, packed_params, config):
    dims = packed_params["dims"]
    nd = dims["nd"]
    B, din = x.shape
    din_p, e_p, tile_l = dims["din_p"], dims["e_p"], dims["tile_l"]

    # batch-block "parallel" axis: 2 only when a second TensorCore exists
    # (v7x, detected via its 64 MiB per-core VMEM) AND the batch is big enough.
    cap = _vmem_capacity_bytes()
    num_bb = 2 if (cap <= 96 * 1024 * 1024 and B >= 32) else 1
    b_pad = _round_up(max(B, 16), 16 * num_bb)   # bf16 sublane packing: x16
    b_blk = b_pad // num_bb

    xp = jnp.zeros((b_pad, din_p), jnp.bfloat16).at[:B, :din].set(
        x.astype(jnp.bfloat16))
    lab2d = jnp.full((b_pad, 1), IGNORED_LABEL_ID, jnp.int32).at[:B, 0].set(
        labels.astype(jnp.int32))
    dom2d = jnp.zeros((b_pad, 1), jnp.int32).at[:B, 0].set(
        label_domain_ids.astype(jnp.int32))

    # only raise the scoped-VMEM limit when the footprint actually needs it
    est = _estimate_vmem_bytes(b_blk, din_p, e_p, tile_l)
    vmem_limit = None
    if est > 12 * 1024 * 1024:
        vmem_limit = min(int(est * 1.5) + (8 << 20), max(cap // 2, 32 << 20))

    stats, dcls = _fused_forward_call(
        xp, lab2d, dom2d, packed_params, num_bb=num_bb,
        arcface_scale=config["arcface_scale"], margin=config["margin"],
        vmem_limit_bytes=vmem_limit)

    stats = stats[:, :B, :]                      # drop padded batch rows
    ce = stats[..., 0]                           # per-sample ArcFace CE (0 if ignored)
    hit = stats[..., 1]                          # per-sample top-5 hit (0 if ignored)
    vflag = stats[..., 2]                        # valid-sample flag
    dce = stats[0, :, 3]                         # per-sample domain CE

    cnt = jnp.sum(vflag, axis=1)                 # [nd]
    denom = jnp.maximum(cnt, 1.0)
    loss_each = jnp.where(cnt > 0, jnp.sum(ce, axis=1) / denom, 0.0)
    acc_each = jnp.where(cnt > 0, jnp.sum(hit, axis=1) / denom, 0.0)

    domain_cls_loss = jnp.mean(dce)
    loss = jnp.sum(loss_each) + config["domain_cls_loss_weight"] * domain_cls_loss

    return {
        "loss": loss,
        "logits": x,                             # module returns backbone features
        "domain_cls_logits": dcls[:B, :nd],
        "top_5_accs_for_each_domain": acc_each[None, :],
        "loss_for_each_domain": loss_each[None, :],
    }


# ----------------------------------------------------------------------------
if __name__ == "__main__":
    B = 8
    backbone_dim = 32
    embed_dim = 16
    domain_to_num_labels = {"landmark": 24, "product_10k": 40, "other": 16}
    num_domains = len(domain_to_num_labels)

    config = {
        "domain_to_num_labels": domain_to_num_labels,
        "domain_cls_loss_weight": 10.0,
        "arcface_scale": 30.0,
        "margin": 0.3,
    }

    key = jax.random.PRNGKey(0)
    k_p, k_x, k_l, k_d = jax.random.split(key, 4)
    params, embed_dim_d = build_params(k_p, backbone_dim, domain_to_num_labels,
                                       embed_dim)
    packed = pack_params(params, domain_to_num_labels)

    # backbone features (OpenCLIP / timm backbone itself not translated)
    x = jax.random.normal(k_x, (B, backbone_dim), jnp.float32)
    label_domain_ids = jax.random.randint(k_d, (B,), 0, num_domains, jnp.int32)
    min_labels = min(domain_to_num_labels.values())
    labels = jax.random.randint(k_l, (B,), 0, min_labels, jnp.int32)

    out = multi_domain_arcface_forward(x, labels, label_domain_ids, packed, config)
    out = jax.tree_util.tree_map(jax.block_until_ready, out)

    assert out["loss"].shape == ()
    assert out["logits"].shape == (B, backbone_dim)
    assert out["domain_cls_logits"].shape == (B, num_domains)
    assert out["top_5_accs_for_each_domain"].shape == (1, num_domains)
    assert out["loss_for_each_domain"].shape == (1, num_domains)
    assert bool(jnp.isfinite(out["loss"]))

    print("KERNEL_OK")
</pallas_src>

<mosaic_0001>
module attributes {stable_mosaic.version = 11 : i64} {
  func.func @_md_arcface_kernel(%arg0: i32, %arg1: i32, %arg2: memref<3xi32, #tpu.memory_space<smem>>, %arg3: memref<3xi32, #tpu.memory_space<smem>>, %arg4: memref<3xi32, #tpu.memory_space<smem>>, %arg5: memref<3xi32, #tpu.memory_space<smem>>, %arg6: memref<16x128xbf16, #tpu.memory_space<vmem>>, %arg7: memref<16x1xi32, #tpu.memory_space<vmem>>, %arg8: memref<16x1xi32, #tpu.memory_space<vmem>>, %arg9: memref<1x128x128xbf16, #tpu.memory_space<vmem>>, %arg10: memref<1x1x128xf32, #tpu.memory_space<vmem>>, %arg11: memref<1x128x128xbf16, #tpu.memory_space<vmem>>, %arg12: memref<1x1x128xf32, #tpu.memory_space<vmem>>, %arg13: memref<128x128xbf16, #tpu.memory_space<vmem>>, %arg14: memref<1x128xf32, #tpu.memory_space<vmem>>, %arg15: memref<1x16x128xf32, #tpu.memory_space<vmem>>, %arg16: memref<16x128xf32, #tpu.memory_space<vmem>>, %arg17: memref<16x128xbf16, #tpu.memory_space<vmem>>, %arg18: memref<16x1xf32, #tpu.memory_space<vmem>>, %arg19: memref<16x1xf32, #tpu.memory_space<vmem>>, %arg20: memref<16x1xf32, #tpu.memory_space<vmem>>, %arg21: memref<16x1xf32, #tpu.memory_space<vmem>>, %arg22: memref<16x128xf32, #tpu.memory_space<vmem>>) attributes {dimension_semantics = [#tpu.dimension_semantics<parallel>, #tpu.dimension_semantics<arbitrary>], iteration_bounds = array<i64: 1, 3>, scalar_prefetch = 4 : i64, scratch_operands = 6 : i64, tpu.core_type = #tpu.core_type<tc>, window_params = [{transform_indices = @transform_0, window_bounds = array<i64: 16, 128>}, {transform_indices = @transform_1, window_bounds = array<i64: 16, 1>}, {transform_indices = @transform_2, window_bounds = array<i64: 16, 1>}, {transform_indices = @transform_3, window_bounds = array<i64: 1, 128, 128>}, {transform_indices = @transform_4, window_bounds = array<i64: 1, 1, 128>}, {transform_indices = @transform_5, window_bounds = array<i64: 1, 128, 128>}, {transform_indices = @transform_6, window_bounds = array<i64: 1, 1, 128>}, {pipeline_mode = #tpu.pipeline_mode<synchronous>, transform_indices = @transform_7, window_bounds = array<i64: 128, 128>}, {pipeline_mode = #tpu.pipeline_mode<synchronous>, transform_indices = @transform_8, window_bounds = array<i64: 1, 128>}, {transform_indices = @transform_9, window_bounds = array<i64: 1, 16, 128>}, {transform_indices = @transform_10, window_bounds = array<i64: 16, 128>}]} {
    %0 = arith.index_cast %arg1 : i32 to index
    %1 = memref.load %arg3[%0] : memref<3xi32, #tpu.memory_space<smem>>
    %2 = arith.index_cast %arg1 : i32 to index
    %3 = memref.load %arg4[%2] : memref<3xi32, #tpu.memory_space<smem>>
    %4 = arith.index_cast %1 : i32 to index
    %5 = memref.load %arg2[%4] : memref<3xi32, #tpu.memory_space<smem>>
    %c0_i32 = arith.constant 0 : i32
    %6 = arith.cmpi eq, %3, %c0_i32 : i32
    %7 = arith.index_cast %arg1 : i32 to index
    %8 = memref.load %arg5[%7] : memref<3xi32, #tpu.memory_space<smem>>
    %c1_i32 = arith.constant 1 : i32
    %9 = arith.cmpi eq, %8, %c1_i32 : i32
    %c0 = arith.constant 0 : index
    %c0_0 = arith.constant 0 : index
    %10 = vector.load %arg8[%c0, %c0_0] : memref<16x1xi32, #tpu.memory_space<vmem>>, vector<16x1xi32>
    %11 = vector.broadcast %1 : i32 to vector<16x1xi32>
    %12 = arith.cmpi eq, %10, %11 : vector<16x1xi32>
    %c0_1 = arith.constant 0 : index
    %c0_2 = arith.constant 0 : index
    %13 = vector.load %arg7[%c0_1, %c0_2] : memref<16x1xi32, #tpu.memory_space<vmem>>, vector<16x1xi32>
    %c-1_i32 = arith.constant -1 : i32
    %14 = vector.broadcast %c-1_i32 : i32 to vector<16x1xi32>
    %15 = arith.select %12, %13, %14 : vector<16x1xi1>, vector<16x1xi32>
    %16 = arith.extui %6 : i1 to i32
    %c0_i32_3 = arith.constant 0 : i32
    %17 = arith.cmpi ne, %16, %c0_i32_3 : i32
    scf.if %17 {
      %cst_62 = arith.constant -1.000000e+30 : f32
      %174 = vector.broadcast %cst_62 : f32 to vector<16x1xf32>
      %c0_63 = arith.constant 0 : index
      %c0_64 = arith.constant 0 : index
      %175 = vector.load %arg18[%c0_63, %c0_64] : memref<16x1xf32, #tpu.memory_space<vmem>>, vector<16x1xf32>
      tpu.vector_store %arg18[%c0_63, %c0_64], %174 {strides = array<i32>} : memref<16x1xf32, #tpu.memory_space<vmem>>, vector<16x1xf32>,
      %cst_65 = arith.constant 0.000000e+00 : f32
      %176 = vector.broadcast %cst_65 : f32 to vector<16x1xf32>
      %c0_66 = arith.constant 0 : index
      %c0_67 = arith.constant 0 : index
      %177 = vector.load %arg19[%c0_66, %c0_67] : memref<16x1xf32, #tpu.memory_space<vmem>>, vector<16x1xf32>
      tpu.vector_store %arg19[%c0_66, %c0_67], %176 {strides = array<i32>} : memref<16x1xf32, #tpu.memory_space<vmem>>, vector<16x1xf32>,
      %cst_68 = arith.constant 0.000000e+00 : f32
      %178 = vector.broadcast %cst_68 : f32 to vector<16x1xf32>
      %c0_69 = arith.constant 0 : index
      %c0_70 = arith.constant 0 : index
      %179 = vector.load %arg20[%c0_69, %c0_70] : memref<16x1xf32, #tpu.memory_space<vmem>>, vector<16x1xf32>
      tpu.vector_store %arg20[%c0_69, %c0_70], %178 {strides = array<i32>} : memref<16x1xf32, #tpu.memory_space<vmem>>, vector<16x1xf32>,
      %cst_71 = arith.constant -1.000000e+30 : f32
      %180 = vector.broadcast %cst_71 : f32 to vector<16x128xf32>
      %c0_72 = arith.constant 0 : index
      %c0_73 = arith.constant 0 : index
      %181 = vector.load %arg22[%c0_72, %c0_73] : memref<16x128xf32, #tpu.memory_space<vmem>>, vector<16x128xf32>
      tpu.vector_store %arg22[%c0_72, %c0_73], %180 {strides = array<i32>} : memref<16x128xf32, #tpu.memory_space<vmem>>, vector<16x128xf32>,
      %c0_74 = arith.constant 0 : index
      %c0_75 = arith.constant 0 : index
      %182 = vector.load %arg6[%c0_74, %c0_75] : memref<16x128xbf16, #tpu.memory_space<vmem>>, vector<16x128xbf16>
      %c0_76 = arith.constant 0 : index
      %c0_77 = arith.constant 0 : index
      %c0_78 = arith.constant 0 : index
      %183 = vector.load %arg9[%c0_76, %c0_77, %c0_78] : memref<1x128x128xbf16, #tpu.memory_space<vmem>>, vector<1x128x128xbf16>
      %184 = vector.shape_cast %183 : vector<1x128x128xbf16> to vector<128x128xbf16>
      %cst_79 = arith.constant dense<0.000000e+00> : vector<16x128xf32>
      %185 = tpu.matmul %182, %184, %cst_79 {dimension_numbers = #tpu.dot_dimension_numbers<[1], [0], [0], [1], [0, 0, 1, 1], [], []>} : vector<16x128xbf16>, vector<128x128xbf16>, vector<16x128xf32> -> vector<16x128xf32>
      %c0_80 = arith.constant 0 : index
      %c0_81 = arith.constant 0 : index
      %c0_82 = arith.constant 0 : index
      %186 = vector.load %arg10[%c0_80, %c0_81, %c0_82] : memref<1x1x128xf32, #tpu.memory_space<vmem>>, vector<1x1x128xf32>
      %187 = vector.shape_cast %186 : vector<1x1x128xf32> to vector<1x128xf32>
      %188 = vector.broadcast %187 : vector<1x128xf32> to vector<16x128xf32>
      %189 = arith.addf %185, %188 : vector<16x128xf32>
      %190 = arith.mulf %189, %189 : vector<16x128xf32>
      %cst_83 = arith.constant dense<0.000000e+00> : vector<16xf32>
      %191 = vector.multi_reduction <add>, %190, %cst_83 [1] : vector<16x128xf32> to vector<16xf32>
      %192 = vector.shape_cast %191 : vector<16xf32> to vector<16x1xf32>
      %cst_84 = arith.constant 1.000000e-24 : f32
      %193 = vector.broadcast %cst_84 : f32 to vector<16x1xf32>
      %194 = arith.addf %192, %193 : vector<16x1xf32>
      %195 = math.rsqrt %194 : vector<16x1xf32>
      %196 = vector.broadcast %195 : vector<16x1xf32> to vector<16x128xf32>
      %197 = arith.mulf %189, %196 : vector<16x128xf32>
      %198 = arith.truncf %197 : vector<16x128xf32> to vector<16x128xbf16>
      %c0_85 = arith.constant 0 : index
      %c0_86 = arith.constant 0 : index
      %199 = vector.load %arg17[%c0_85, %c0_86] : memref<16x128xbf16, #tpu.memory_space<vmem>>, vector<16x128xbf16>
      tpu.vector_store %arg17[%c0_85, %c0_86], %198 {strides = array<i32>} : memref<16x128xbf16, #tpu.memory_space<vmem>>, vector<16x128xbf16>,
    } else {
    }
    %c0_i32_4 = arith.constant 0 : i32
    %18 = arith.cmpi eq, %1, %c0_i32_4 : i32
    %19 = arith.andi %6, %18 : i1
    %20 = arith.extui %19 : i1 to i32
    %c0_i32_5 = arith.constant 0 : i32
    %21 = arith.cmpi ne, %20, %c0_i32_5 : i32
    scf.if %21 {
      %c0_62 = arith.constant 0 : index
      %c0_63 = arith.constant 0 : index
      %174 = vector.load %arg6[%c0_62, %c0_63] : memref<16x128xbf16, #tpu.memory_space<vmem>>, vector<16x128xbf16>
      %c0_64 = arith.constant 0 : index
      %c0_65 = arith.constant 0 : index
      %175 = vector.load %arg13[%c0_64, %c0_65] : memref<128x128xbf16, #tpu.memory_space<vmem>>, vector<128x128xbf16>
      %cst_66 = arith.constant dense<0.000000e+00> : vector<16x128xf32>
      %176 = tpu.matmul %174, %175, %cst_66 {dimension_numbers = #tpu.dot_dimension_numbers<[1], [0], [0], [1], [0, 0, 1, 1], [], []>} : vector<16x128xbf16>, vector<128x128xbf16>, vector<16x128xf32> -> vector<16x128xf32>
      %c0_67 = arith.constant 0 : index
      %c0_68 = arith.constant 0 : index
      %177 = vector.load %arg14[%c0_67, %c0_68] : memref<1x128xf32, #tpu.memory_space<vmem>>, vector<1x128xf32>
      %178 = vector.broadcast %177 : vector<1x128xf32> to vector<16x128xf32>
      %179 = arith.addf %176, %178 : vector<16x128xf32>
      %180 = tpu.iota {dimensions = array<i32: 1>} : vector<1x128xi32>
      %c3_i32_69 = arith.constant 3 : i32
      %181 = vector.broadcast %c3_i32_69 : i32 to vector<1x128xi32>
      %182 = arith.cmpi slt, %180, %181 : vector<1x128xi32>
      %cst_70 = arith.constant -1.000000e+30 : f32
      %183 = vector.shape_cast %182 : vector<1x128xi1> to vector<1x128xi1>
      %184 = vector.broadcast %183 : vector<1x128xi1> to vector<16x128xi1>
      %185 = vector.broadcast %cst_70 : f32 to vector<16x128xf32>
      %186 = arith.select %184, %179, %185 : vector<16x128xi1>, vector<16x128xf32>
      %cst_71 = arith.constant dense<0xFF800000> : vector<16xf32>
      %187 = vector.multi_reduction <maximumf>, %186, %cst_71 [1] : vector<16x128xf32> to vector<16xf32>
      %188 = vector.shape_cast %187 : vector<16xf32> to vector<16x1xf32>
      %189 = vector.broadcast %188 : vector<16x1xf32> to vector<16x128xf32>
      %190 = arith.subf %186, %189 : vector<16x128xf32>
      %191 = math.exp %190 : vector<16x128xf32>
      %cst_72 = arith.constant dense<0.000000e+00> : vector<16xf32>
      %192 = vector.multi_reduction <add>, %191, %cst_72 [1] : vector<16x128xf32> to vector<16xf32>
      %193 = vector.shape_cast %192 : vector<16xf32> to vector<16x1xf32>
      %c0_73 = arith.constant 0 : index
      %c0_74 = arith.constant 0 : index
      %194 = vector.load %arg8[%c0_73, %c0_74] : memref<16x1xi32, #tpu.memory_space<vmem>>, vector<16x1xi32>
      %195 = vector.broadcast %180 : vector<1x128xi32> to vector<16x128xi32>
      %196 = vector.broadcast %194 : vector<16x1xi32> to vector<16x128xi32>
      %197 = arith.cmpi eq, %195, %196 : vector<16x128xi32>
      %cst_75 = arith.constant 0.000000e+00 : f32
      %198 = vector.broadcast %cst_75 : f32 to vector<16x128xf32>
      %199 = arith.select %197, %186, %198 : vector<16x128xi1>, vector<16x128xf32>
      %cst_76 = arith.constant dense<0.000000e+00> : vector<16xf32>
      %200 = vector.multi_reduction <add>, %199, %cst_76 [1] : vector<16x128xf32> to vector<16xf32>
      %201 = vector.shape_cast %200 : vector<16xf32> to vector<16x1xf32>
      %202 = math.log %193 : vector<16x1xf32>
      %203 = arith.addf %188, %202 : vector<16x1xf32>
      %204 = arith.subf %203, %201 : vector<16x1xf32>
      %c0_77 = arith.constant 0 : index
      %c0_78 = arith.constant 0 : index
      %205 = vector.load %arg21[%c0_77, %c0_78] : memref<16x1xf32, #tpu.memory_space<vmem>>, vector<16x1xf32>
      tpu.vector_store %arg21[%c0_77, %c0_78], %204 {strides = array<i32>} : memref<16x1xf32, #tpu.memory_space<vmem>>, vector<16x1xf32>,
      %cst_79 = arith.constant 0.000000e+00 : f32
      %206 = vector.shape_cast %182 : vector<1x128xi1> to vector<1x128xi1>
      %207 = vector.broadcast %206 : vector<1x128xi1> to vector<16x128xi1>
      %208 = vector.broadcast %cst_79 : f32 to vector<16x128xf32>
      %209 = arith.select %207, %179, %208 : vector<16x128xi1>, vector<16x128xf32>
      %c0_80 = arith.constant 0 : index
      %c0_81 = arith.constant 0 : index
      %210 = vector.load %arg16[%c0_80, %c0_81] : memref<16x128xf32, #tpu.memory_space<vmem>>, vector<16x128xf32>
      tpu.vector_store %arg16[%c0_80, %c0_81], %209 {strides = array<i32>} : memref<16x128xf32, #tpu.memory_space<vmem>>, vector<16x128xf32>,
    } else {
    }
    %c0_6 = arith.constant 0 : index
    %c0_7 = arith.constant 0 : index
    %22 = vector.load %arg17[%c0_6, %c0_7] : memref<16x128xbf16, #tpu.memory_space<vmem>>, vector<16x128xbf16>
    %c0_8 = arith.constant 0 : index
    %c0_9 = arith.constant 0 : index
    %c0_10 = arith.constant 0 : index
    %23 = vector.load %arg11[%c0_8, %c0_9, %c0_10] : memref<1x128x128xbf16, #tpu.memory_space<vmem>>, vector<1x128x128xbf16>
    %24 = vector.shape_cast %23 : vector<1x128x128xbf16> to vector<128x128xbf16>
    %cst = arith.constant dense<0.000000e+00> : vector<16x128xf32>
    %25 = tpu.matmul %22, %24, %cst {dimension_numbers = #tpu.dot_dimension_numbers<[1], [0], [0], [1], [0, 0, 1, 1], [], []>} : vector<16x128xbf16>, vector<128x128xbf16>, vector<16x128xf32> -> vector<16x128xf32>
    %c0_11 = arith.constant 0 : index
    %c0_12 = arith.constant 0 : index
    %c0_13 = arith.constant 0 : index
    %26 = vector.load %arg12[%c0_11, %c0_12, %c0_13] : memref<1x1x128xf32, #tpu.memory_space<vmem>>, vector<1x1x128xf32>
    %27 = vector.shape_cast %26 : vector<1x1x128xf32> to vector<1x128xf32>
    %28 = vector.broadcast %27 : vector<1x128xf32> to vector<16x128xf32>
    %29 = arith.mulf %25, %28 : vector<16x128xf32>
    %30 = tpu.iota {dimensions = array<i32: 1>} : vector<1x128xi32>
    %c128_i32 = arith.constant 128 : i32
    %31 = arith.muli %3, %c128_i32 : i32
    %32 = vector.broadcast %31 : i32 to vector<1x128xi32>
    %33 = arith.addi %30, %32 : vector<1x128xi32>
    %34 = vector.broadcast %5 : i32 to vector<1x128xi32>
    %35 = arith.cmpi slt, %33, %34 : vector<1x128xi32>
    %36 = vector.broadcast %33 : vector<1x128xi32> to vector<16x128xi32>
    %37 = vector.broadcast %15 : vector<16x1xi32> to vector<16x128xi32>
    %38 = arith.cmpi eq, %36, %37 : vector<16x128xi32>
    %39 = vector.broadcast %35 : vector<1x128xi1> to vector<16x128xi1>
    %40 = arith.andi %39, %38 : vector<16x128xi1>
    %cst_14 = arith.constant dense<true> : vector<16x128xi1>
    %41 = arith.xori %38, %cst_14 : vector<16x128xi1>
    %42 = vector.broadcast %35 : vector<1x128xi1> to vector<16x128xi1>
    %43 = arith.andi %42, %41 : vector<16x128xi1>
    %cst_15 = arith.constant 3.000000e+01 : f32
    %44 = vector.broadcast %cst_15 : f32 to vector<16x128xf32>
    %45 = arith.mulf %44, %29 : vector<16x128xf32>
    %cst_16 = arith.constant -1.000000e+30 : f32
    %46 = vector.broadcast %cst_16 : f32 to vector<16x128xf32>
    %47 = arith.select %43, %45, %46 : vector<16x128xi1>, vector<16x128xf32>
    %c0_17 = arith.constant 0 : index
    %c0_18 = arith.constant 0 : index
    %48 = vector.load %arg18[%c0_17, %c0_18] : memref<16x1xf32, #tpu.memory_space<vmem>>, vector<16x1xf32>
    %cst_19 = arith.constant dense<0xFF800000> : vector<16xf32>
    %49 = vector.multi_reduction <maximumf>, %47, %cst_19 [1] : vector<16x128xf32> to vector<16xf32>
    %50 = vector.shape_cast %49 : vector<16xf32> to vector<16x1xf32>
    %51 = arith.maximumf %48, %50 : vector<16x1xf32>
    %c0_20 = arith.constant 0 : index
    %c0_21 = arith.constant 0 : index
    %52 = vector.load %arg18[%c0_20, %c0_21] : memref<16x1xf32, #tpu.memory_space<vmem>>, vector<16x1xf32>
    %53 = arith.subf %52, %51 : vector<16x1xf32>
    %54 = math.exp %53 : vector<16x1xf32>
    %c0_22 = arith.constant 0 : index
    %c0_23 = arith.constant 0 : index
    %55 = vector.load %arg19[%c0_22, %c0_23] : memref<16x1xf32, #tpu.memory_space<vmem>>, vector<16x1xf32>
    %56 = arith.mulf %54, %55 : vector<16x1xf32>
    %57 = vector.broadcast %51 : vector<16x1xf32> to vector<16x128xf32>
    %58 = arith.subf %47, %57 : vector<16x128xf32>
    %59 = math.exp %58 : vector<16x128xf32>
    %cst_24 = arith.constant dense<0.000000e+00> : vector<16xf32>
    %60 = vector.multi_reduction <add>, %59, %cst_24 [1] : vector<16x128xf32> to vector<16xf32>
    %61 = vector.shape_cast %60 : vector<16xf32> to vector<16x1xf32>
    %62 = arith.addf %56, %61 : vector<16x1xf32>
    %c0_25 = arith.constant 0 : index
    %c0_26 = arith.constant 0 : index
    %63 = vector.load %arg19[%c0_25, %c0_26] : memref<16x1xf32, #tpu.memory_space<vmem>>, vector<16x1xf32>
    tpu.vector_store %arg19[%c0_25, %c0_26], %62 {strides = array<i32>} : memref<16x1xf32, #tpu.memory_space<vmem>>, vector<16x1xf32>,
    %c0_27 = arith.constant 0 : index
    %c0_28 = arith.constant 0 : index
    %64 = vector.load %arg18[%c0_27, %c0_28] : memref<16x1xf32, #tpu.memory_space<vmem>>, vector<16x1xf32>
    tpu.vector_store %arg18[%c0_27, %c0_28], %51 {strides = array<i32>} : memref<16x1xf32, #tpu.memory_space<vmem>>, vector<16x1xf32>,
    %c0_29 = arith.constant 0 : index
    %c0_30 = arith.constant 0 : index
    %65 = vector.load %arg20[%c0_29, %c0_30] : memref<16x1xf32, #tpu.memory_space<vmem>>, vector<16x1xf32>
    %cst_31 = arith.constant 0.000000e+00 : f32
    %66 = vector.broadcast %cst_31 : f32 to vector<16x128xf32>
    %67 = arith.select %40, %29, %66 : vector<16x128xi1>, vector<16x128xf32>
    %cst_32 = arith.constant dense<0.000000e+00> : vector<16xf32>
    %68 = vector.multi_reduction <add>, %67, %cst_32 [1] : vector<16x128xf32> to vector<16xf32>
    %69 = vector.shape_cast %68 : vector<16xf32> to vector<16x1xf32>
    %70 = arith.addf %65, %69 : vector<16x1xf32>
    %c0_33 = arith.constant 0 : index
    %c0_34 = arith.constant 0 : index
    %71 = vector.load %arg20[%c0_33, %c0_34] : memref<16x1xf32, #tpu.memory_space<vmem>>, vector<16x1xf32>
    tpu.vector_store %arg20[%c0_33, %c0_34], %70 {strides = array<i32>} : memref<16x1xf32, #tpu.memory_space<vmem>>, vector<16x1xf32>,
    %cst_35 = arith.constant -1.000000e+30 : f32
    %72 = vector.shape_cast %35 : vector<1x128xi1> to vector<1x128xi1>
    %73 = vector.broadcast %72 : vector<1x128xi1> to vector<16x128xi1>
    %74 = vector.broadcast %cst_35 : f32 to vector<16x128xf32>
    %75 = arith.select %73, %29, %74 : vector<16x128xi1>, vector<16x128xf32>
    %c0_36 = arith.constant 0 : index
    %c0_37 = arith.constant 0 : index
    %76 = vector.load %arg22[%c0_36, %c0_37] : memref<16x128xf32, #tpu.memory_space<vmem>>, vector<16x128xf32>
    %77 = tpu.iota {dimensions = array<i32: 1>} : vector<1x128xi32>
    %cst_38 = arith.constant -1.000000e+30 : f32
    %78 = vector.broadcast %cst_38 : f32 to vector<16x128xf32>
    %cst_39 = arith.constant dense<0xFF800000> : vector<16xf32>
    %79 = vector.multi_reduction <maximumf>, %75, %cst_39 [1] : vector<16x128xf32> to vector<16xf32>
    %80 = vector.shape_cast %79 : vector<16xf32> to vector<16x1xf32>
    %cst_40 = arith.constant dense<0xFF800000> : vector<16xf32>
    %81 = vector.multi_reduction <maximumf>, %76, %cst_40 [1] : vector<16x128xf32> to vector<16xf32>
    %82 = vector.shape_cast %81 : vector<16xf32> to vector<16x1xf32>
    %83 = arith.maximumf %80, %82 : vector<16x1xf32>
    %c0_i32_41 = arith.constant 0 : i32
    %84 = vector.broadcast %c0_i32_41 : i32 to vector<1x128xi32>
    %85 = arith.cmpi eq, %77, %84 : vector<1x128xi32>
    %86 = vector.shape_cast %85 : vector<1x128xi1> to vector<1x128xi1>
    %87 = vector.broadcast %86 : vector<1x128xi1> to vector<16x128xi1>
    %88 = vector.shape_cast %83 : vector<16x1xf32> to vector<16x1xf32>
    %89 = vector.broadcast %88 : vector<16x1xf32> to vector<16x128xf32>
    %90 = arith.select %87, %89, %78 : vector<16x128xi1>, vector<16x128xf32>
    %91 = vector.broadcast %83 : vector<16x1xf32> to vector<16x128xf32>
    %92 = arith.cmpf oeq, %75, %91 : vector<16x128xf32>
    %cst_42 = arith.constant -1.000000e+30 : f32
    %93 = vector.broadcast %cst_42 : f32 to vector<16x128xf32>
    %94 = arith.select %92, %93, %75 : vector<16x128xi1>, vector<16x128xf32>
    %95 = vector.broadcast %83 : vector<16x1xf32> to vector<16x128xf32>
    %96 = arith.cmpf oeq, %76, %95 : vector<16x128xf32>
    %cst_43 = arith.constant -1.000000e+30 : f32
    %97 = vector.broadcast %cst_43 : f32 to vector<16x128xf32>
    %98 = arith.select %96, %97, %76 : vector<16x128xi1>, vector<16x128xf32>
    %cst_44 = arith.constant dense<0xFF800000> : vector<16xf32>
    %99 = vector.multi_reduction <maximumf>, %94, %cst_44 [1] : vector<16x128xf32> to vector<16xf32>
    %100 = vector.shape_cast %99 : vector<16xf32> to vector<16x1xf32>
    %cst_45 = arith.constant dense<0xFF800000> : vector<16xf32>
    %101 = vector.multi_reduction <maximumf>, %98, %cst_45 [1] : vector<16x128xf32> to vector<16xf32>
    %102 = vector.shape_cast %101 : vector<16xf32> to vector<16x1xf32>
    %103 = arith.maximumf %100, %102 : vector<16x1xf32>
    %c1_i32_46 = arith.constant 1 : i32
    %104 = vector.broadcast %c1_i32_46 : i32 to vector<1x128xi32>
    %105 = arith.cmpi eq, %77, %104 : vector<1x128xi32>
    %106 = vector.shape_cast %105 : vector<1x128xi1> to vector<1x128xi1>
    %107 = vector.broadcast %106 : vector<1x128xi1> to vector<16x128xi1>
    %108 = vector.shape_cast %103 : vector<16x1xf32> to vector<16x1xf32>
    %109 = vector.broadcast %108 : vector<16x1xf32> to vector<16x128xf32>
    %110 = arith.select %107, %109, %90 : vector<16x128xi1>, vector<16x128xf32>
    %111 = vector.broadcast %103 : vector<16x1xf32> to vector<16x128xf32>
    %112 = arith.cmpf oeq, %94, %111 : vector<16x128xf32>
    %cst_47 = arith.constant -1.000000e+30 : f32
    %113 = vector.broadcast %cst_47 : f32 to vector<16x128xf32>
    %114 = arith.select %112, %113, %94 : vector<16x128xi1>, vector<16x128xf32>
    %115 = vector.broadcast %103 : vector<16x1xf32> to vector<16x128xf32>
    %116 = arith.cmpf oeq, %98, %115 : vector<16x128xf32>
    %cst_48 = arith.constant -1.000000e+30 : f32
    %117 = vector.broadcast %cst_48 : f32 to vector<16x128xf32>
    %118 = arith.select %116, %117, %98 : vector<16x128xi1>, vector<16x128xf32>
    %cst_49 = arith.constant dense<0xFF800000> : vector<16xf32>
    %119 = vector.multi_reduction <maximumf>, %114, %cst_49 [1] : vector<16x128xf32> to vector<16xf32>
    %120 = vector.shape_cast %119 : vector<16xf32> to vector<16x1xf32>
    %cst_50 = arith.constant dense<0xFF800000> : vector<16xf32>
    %121 = vector.multi_reduction <maximumf>, %118, %cst_50 [1] : vector<16x128xf32> to vector<16xf32>
    %122 = vector.shape_cast %121 : vector<16xf32> to vector<16x1xf32>
    %123 = arith.maximumf %120, %122 : vector<16x1xf32>
    %c2_i32 = arith.constant 2 : i32
    %124 = vector.broadcast %c2_i32 : i32 to vector<1x128xi32>
    %125 = arith.cmpi eq, %77, %124 : vector<1x128xi32>
    %126 = vector.shape_cast %125 : vector<1x128xi1> to vector<1x128xi1>
    %127 = vector.broadcast %126 : vector<1x128xi1> to vector<16x128xi1>
    %128 = vector.shape_cast %123 : vector<16x1xf32> to vector<16x1xf32>
    %129 = vector.broadcast %128 : vector<16x1xf32> to vector<16x128xf32>
    %130 = arith.select %127, %129, %110 : vector<16x128xi1>, vector<16x128xf32>
    %131 = vector.broadcast %123 : vector<16x1xf32> to vector<16x128xf32>
    %132 = arith.cmpf oeq, %114, %131 : vector<16x128xf32>
    %cst_51 = arith.constant -1.000000e+30 : f32
    %133 = vector.broadcast %cst_51 : f32 to vector<16x128xf32>
    %134 = arith.select %132, %133, %114 : vector<16x128xi1>, vector<16x128xf32>
    %135 = vector.broadcast %123 : vector<16x1xf32> to vector<16x128xf32>
    %136 = arith.cmpf oeq, %118, %135 : vector<16x128xf32>
    %cst_52 = arith.constant -1.000000e+30 : f32
    %137 = vector.broadcast %cst_52 : f32 to vector<16x128xf32>
    %138 = arith.select %136, %137, %118 : vector<16x128xi1>, vector<16x128xf32>
    %cst_53 = arith.constant dense<0xFF800000> : vector<16xf32>
    %139 = vector.multi_reduction <maximumf>, %134, %cst_53 [1] : vector<16x128xf32> to vector<16xf32>
    %140 = vector.shape_cast %139 : vector<16xf32> to vector<16x1xf32>
    %cst_54 = arith.constant dense<0xFF800000> : vector<16xf32>
    %141 = vector.multi_reduction <maximumf>, %138, %cst_54 [1] : vector<16x128xf32> to vector<16xf32>
    %142 = vector.shape_cast %141 : vector<16xf32> to vector<16x1xf32>
    %143 = arith.maximumf %140, %142 : vector<16x1xf32>
    %c3_i32 = arith.constant 3 : i32
    %144 = vector.broadcast %c3_i32 : i32 to vector<1x128xi32>
    %145 = arith.cmpi eq, %77, %144 : vector<1x128xi32>
    %146 = vector.shape_cast %145 : vector<1x128xi1> to vector<1x128xi1>
    %147 = vector.broadcast %146 : vector<1x128xi1> to vector<16x128xi1>
    %148 = vector.shape_cast %143 : vector<16x1xf32> to vector<16x1xf32>
    %149 = vector.broadcast %148 : vector<16x1xf32> to vector<16x128xf32>
    %150 = arith.select %147, %149, %130 : vector<16x128xi1>, vector<16x128xf32>
    %151 = vector.broadcast %143 : vector<16x1xf32> to vector<16x128xf32>
    %152 = arith.cmpf oeq, %134, %151 : vector<16x128xf32>
    %cst_55 = arith.constant -1.000000e+30 : f32
    %153 = vector.broadcast %cst_55 : f32 to vector<16x128xf32>
    %154 = arith.select %152, %153, %134 : vector<16x128xi1>, vector<16x128xf32>
    %155 = vector.broadcast %143 : vector<16x1xf32> to vector<16x128xf32>
    %156 = arith.cmpf oeq, %138, %155 : vector<16x128xf32>
    %cst_56 = arith.constant -1.000000e+30 : f32
    %157 = vector.broadcast %cst_56 : f32 to vector<16x128xf32>
    %158 = arith.select %156, %157, %138 : vector<16x128xi1>, vector<16x128xf32>
    %cst_57 = arith.constant dense<0xFF800000> : vector<16xf32>
    %159 = vector.multi_reduction <maximumf>, %154, %cst_57 [1] : vector<16x128xf32> to vector<16xf32>
    %160 = vector.shape_cast %159 : vector<16xf32> to vector<16x1xf32>
    %cst_58 = arith.constant dense<0xFF800000> : vector<16xf32>
    %161 = vector.multi_reduction <maximumf>, %158, %cst_58 [1] : vector<16x128xf32> to vector<16xf32>
    %162 = vector.shape_cast %161 : vector<16xf32> to vector<16x1xf32>
    %163 = arith.maximumf %160, %162 : vector<16x1xf32>
    %c4_i32 = arith.constant 4 : i32
    %164 = vector.broadcast %c4_i32 : i32 to vector<1x128xi32>
    %165 = arith.cmpi eq, %77, %164 : vector<1x128xi32>
    %166 = vector.shape_cast %165 : vector<1x128xi1> to vector<1x128xi1>
    %167 = vector.broadcast %166 : vector<1x128xi1> to vector<16x128xi1>
    %168 = vector.shape_cast %163 : vector<16x1xf32> to vector<16x1xf32>
    %169 = vector.broadcast %168 : vector<16x1xf32> to vector<16x128xf32>
    %170 = arith.select %167, %169, %150 : vector<16x128xi1>, vector<16x128xf32>
    %c0_59 = arith.constant 0 : index
    %c0_60 = arith.constant 0 : index
    %171 = vector.load %arg22[%c0_59, %c0_60] : memref<16x128xf32, #tpu.memory_space<vmem>>, vector<16x128xf32>
    tpu.vector_store %arg22[%c0_59, %c0_60], %170 {strides = array<i32>} : memref<16x128xf32, #tpu.memory_space<vmem>>, vector<16x128xf32>,
    %172 = arith.extui %9 : i1 to i32
    %c0_i32_61 = arith.constant 0 : i32
    %173 = arith.cmpi ne, %172, %c0_i32_61 : i32
    scf.if %173 {
      %c0_i32_62 = arith.constant 0 : i32
      %174 = vector.broadcast %c0_i32_62 : i32 to vector<16x1xi32>
      %175 = arith.cmpi sge, %15, %174 : vector<16x1xi32>
      %c0_63 = arith.constant 0 : index
      %c0_64 = arith.constant 0 : index
      %176 = vector.load %arg20[%c0_63, %c0_64] : memref<16x1xf32, #tpu.memory_space<vmem>>, vector<16x1xf32>
      %177 = arith.mulf %176, %176 : vector<16x1xf32>
      %cst_65 = arith.constant 1.000000e+00 : f32
      %178 = vector.broadcast %cst_65 : f32 to vector<16x1xf32>
      %179 = arith.subf %178, %177 : vector<16x1xf32>
      %cst_66 = arith.constant 0.000000e+00 : f32
      %cst_67 = arith.constant 1.000000e+00 : f32
      %180 = vector.broadcast %cst_66 : f32 to vector<16x1xf32>
      %181 = arith.maximumf %180, %179 : vector<16x1xf32>
      %182 = vector.broadcast %cst_67 : f32 to vector<16x1xf32>
      %183 = arith.minimumf %182, %181 : vector<16x1xf32>
      %184 = math.sqrt %183 : vector<16x1xf32>
      %cst_68 = arith.constant 0.955336511 : f32
      %185 = vector.broadcast %cst_68 : f32 to vector<16x1xf32>
      %186 = arith.mulf %176, %185 : vector<16x1xf32>
      %cst_69 = arith.constant 0.295520216 : f32
      %187 = vector.broadcast %cst_69 : f32 to vector<16x1xf32>
      %188 = arith.mulf %184, %187 : vector<16x1xf32>
      %189 = arith.subf %186, %188 : vector<16x1xf32>
      %cst_70 = arith.constant -0.955336511 : f32
      %190 = vector.broadcast %cst_70 : f32 to vector<16x1xf32>
      %191 = arith.cmpf ogt, %176, %190 : vector<16x1xf32>
      %cst_71 = arith.constant 0.0886560603 : f32
      %192 = vector.broadcast %cst_71 : f32 to vector<16x1xf32>
      %193 = arith.subf %176, %192 : vector<16x1xf32>
      %194 = arith.select %191, %189, %193 : vector<16x1xi1>, vector<16x1xf32>
      %c0_72 = arith.constant 0 : index
      %c0_73 = arith.constant 0 : index
      %195 = vector.load %arg18[%c0_72, %c0_73] : memref<16x1xf32, #tpu.memory_space<vmem>>, vector<16x1xf32>
      %c0_74 = arith.constant 0 : index
      %c0_75 = arith.constant 0 : index
      %196 = vector.load %arg19[%c0_74, %c0_75] : memref<16x1xf32, #tpu.memory_space<vmem>>, vector<16x1xf32>
      %cst_76 = arith.constant 3.000000e+01 : f32
      %197 = vector.broadcast %cst_76 : f32 to vector<16x1xf32>
      %198 = arith.mulf %197, %194 : vector<16x1xf32>
      %199 = arith.subf %198, %195 : vector<16x1xf32>
      %200 = math.exp %199 : vector<16x1xf32>
      %201 = arith.addf %196, %200 : vector<16x1xf32>
      %202 = math.log %201 : vector<16x1xf32>
      %203 = arith.addf %195, %202 : vector<16x1xf32>
      %cst_77 = arith.constant 3.000000e+01 : f32
      %204 = vector.broadcast %cst_77 : f32 to vector<16x1xf32>
      %205 = arith.mulf %204, %194 : vector<16x1xf32>
      %206 = arith.subf %203, %205 : vector<16x1xf32>
      %cst_78 = arith.constant 0.000000e+00 : f32
      %207 = vector.broadcast %cst_78 : f32 to vector<16x1xf32>
      %208 = arith.select %175, %206, %207 : vector<16x1xi1>, vector<16x1xf32>
      %c0_79 = arith.constant 0 : index
      %c0_80 = arith.constant 0 : index
      %209 = vector.load %arg22[%c0_79, %c0_80] : memref<16x128xf32, #tpu.memory_space<vmem>>, vector<16x128xf32>
      %210 = vector.broadcast %176 : vector<16x1xf32> to vector<16x128xf32>
      %211 = arith.cmpf ogt, %209, %210 : vector<16x128xf32>
      %212 = arith.extui %211 : vector<16x128xi1> to vector<16x128xi32>
      %213 = arith.sitofp %212 : vector<16x128xi32> to vector<16x128xf32>
      %cst_81 = arith.constant dense<0.000000e+00> : vector<16xf32>
      %214 = vector.multi_reduction <add>, %213, %cst_81 [1] : vector<16x128xf32> to vector<16xf32>
      %215 = vector.shape_cast %214 : vector<16xf32> to vector<16x1xf32>
      %cst_82 = arith.constant 5.000000e+00 : f32
      %216 = vector.broadcast %cst_82 : f32 to vector<16x1xf32>
      %217 = arith.cmpf olt, %215, %216 : vector<16x1xf32>
      %218 = arith.extui %217 : vector<16x1xi1> to vector<16x1xi32>
      %219 = arith.sitofp %218 : vector<16x1xi32> to vector<16x1xf32>
      %cst_83 = arith.constant 0.000000e+00 : f32
      %220 = vector.broadcast %cst_83 : f32 to vector<16x1xf32>
      %221 = arith.select %175, %219, %220 : vector<16x1xi1>, vector<16x1xf32>
      %222 = arith.extui %175 : vector<16x1xi1> to vector<16x1xi32>
      %223 = arith.sitofp %222 : vector<16x1xi32> to vector<16x1xf32>
      %224 = tpu.iota {dimensions = array<i32: 1>} : vector<1x128xi32>
      %c0_i32_84 = arith.constant 0 : i32
      %225 = vector.broadcast %c0_i32_84 : i32 to vector<1x128xi32>
      %226 = arith.cmpi eq, %224, %225 : vector<1x128xi32>
      %c1_i32_85 = arith.constant 1 : i32
      %227 = vector.broadcast %c1_i32_85 : i32 to vector<1x128xi32>
      %228 = arith.cmpi eq, %224, %227 : vector<1x128xi32>
      %c2_i32_86 = arith.constant 2 : i32
      %229 = vector.broadcast %c2_i32_86 : i32 to vector<1x128xi32>
      %230 = arith.cmpi eq, %224, %229 : vector<1x128xi32>
      %c3_i32_87 = arith.constant 3 : i32
      %231 = vector.broadcast %c3_i32_87 : i32 to vector<1x128xi32>
      %232 = arith.cmpi eq, %224, %231 : vector<1x128xi32>
      %c0_88 = arith.constant 0 : index
      %c0_89 = arith.constant 0 : index
      %233 = vector.load %arg21[%c0_88, %c0_89] : memref<16x1xf32, #tpu.memory_space<vmem>>, vector<16x1xf32>
      %cst_90 = arith.constant 0.000000e+00 : f32
      %234 = vector.shape_cast %232 : vector<1x128xi1> to vector<1x128xi1>
      %235 = vector.broadcast %234 : vector<1x128xi1> to vector<16x128xi1>
      %236 = vector.shape_cast %233 : vector<16x1xf32> to vector<16x1xf32>
      %237 = vector.broadcast %236 : vector<16x1xf32> to vector<16x128xf32>
      %238 = vector.broadcast %cst_90 : f32 to vector<16x128xf32>
      %239 = arith.select %235, %237, %238 : vector<16x128xi1>, vector<16x128xf32>
      %240 = vector.shape_cast %230 : vector<1x128xi1> to vector<1x128xi1>
      %241 = vector.broadcast %240 : vector<1x128xi1> to vector<16x128xi1>
      %242 = vector.shape_cast %223 : vector<16x1xf32> to vector<16x1xf32>
      %243 = vector.broadcast %242 : vector<16x1xf32> to vector<16x128xf32>
      %244 = arith.select %241, %243, %239 : vector<16x128xi1>, vector<16x128xf32>
      %245 = vector.shape_cast %228 : vector<1x128xi1> to vector<1x128xi1>
      %246 = vector.broadcast %245 : vector<1x128xi1> to vector<16x128xi1>
      %247 = vector.shape_cast %221 : vector<16x1xf32> to vector<16x1xf32>
      %248 = vector.broadcast %247 : vector<16x1xf32> to vector<16x128xf32>
      %249 = arith.select %246, %248, %244 : vector<16x128xi1>, vector<16x128xf32>
      %250 = vector.shape_cast %226 : vector<1x128xi1> to vector<1x128xi1>
      %251 = vector.broadcast %250 : vector<1x128xi1> to vector<16x128xi1>
      %252 = vector.shape_cast %208 : vector<16x1xf32> to vector<16x1xf32>
      %253 = vector.broadcast %252 : vector<16x1xf32> to vector<16x128xf32>
      %254 = arith.select %251, %253, %249 : vector<16x128xi1>, vector<16x128xf32>
      %c0_91 = arith.constant 0 : index
      %c0_92 = arith.constant 0 : index
      %c0_93 = arith.constant 0 : index
      %255 = vector.load %arg15[%c0_91, %c0_92, %c0_93] : memref<1x16x128xf32, #tpu.memory_space<vmem>>, vector<1x16x128xf32>
      %256 = vector.shape_cast %255 : vector<1x16x128xf32> to vector<16x128xf32>
      %257 = vector.shape_cast %254 : vector<16x128xf32> to vector<1x16x128xf32>
      tpu.vector_store %arg15[%c0_91, %c0_92, %c0_93], %257 {strides = array<i32>} : memref<1x16x128xf32, #tpu.memory_space<vmem>>, vector<1x16x128xf32>,
    } else {
    }
    return
  }
  func.func @transform_0(%arg0: i32, %arg1: i32, %arg2: memref<3xi32, #tpu.memory_space<smem>>, %arg3: memref<3xi32, #tpu.memory_space<smem>>, %arg4: memref<3xi32, #tpu.memory_space<smem>>, %arg5: memref<3xi32, #tpu.memory_space<smem>>) -> (i32, i32) {
    %c0_i32 = arith.constant 0 : i32
    %c0_i32_0 = arith.constant 0 : i32
    return %arg0, %c0_i32 : i32, i32
  }
  func.func @transform_1(%arg0: i32, %arg1: i32, %arg2: memref<3xi32, #tpu.memory_space<smem>>, %arg3: memref<3xi32, #tpu.memory_space<smem>>, %arg4: memref<3xi32, #tpu.memory_space<smem>>, %arg5: memref<3xi32, #tpu.memory_space<smem>>) -> (i32, i32) {
    %c0_i32 = arith.constant 0 : i32
    %c0_i32_0 = arith.constant 0 : i32
    return %arg0, %c0_i32 : i32, i32
  }
  func.func @transform_2(%arg0: i32, %arg1: i32, %arg2: memref<3xi32, #tpu.memory_space<smem>>, %arg3: memref<3xi32, #tpu.memory_space<smem>>, %arg4: memref<3xi32, #tpu.memory_space<smem>>, %arg5: memref<3xi32, #tpu.memory_space<smem>>) -> (i32, i32) {
    %c0_i32 = arith.constant 0 : i32
    %c0_i32_0 = arith.constant 0 : i32
    return %arg0, %c0_i32 : i32, i32
  }
  func.func @transform_3(%arg0: i32, %arg1: i32, %arg2: memref<3xi32, #tpu.memory_space<smem>>, %arg3: memref<3xi32, #tpu.memory_space<smem>>, %arg4: memref<3xi32, #tpu.memory_space<smem>>, %arg5: memref<3xi32, #tpu.memory_space<smem>>) -> (i32, i32, i32) {
    %0 = arith.index_cast %arg1 : i32 to index
    %1 = memref.load %arg3[%0] : memref<3xi32, #tpu.memory_space<smem>>
    %c0_i32 = arith.constant 0 : i32
    %c0_i32_0 = arith.constant 0 : i32
    %c0_i32_1 = arith.constant 0 : i32
    return %1, %c0_i32, %c0_i32_0 : i32, i32, i32
  }
  func.func @transform_4(%arg0: i32, %arg1: i32, %arg2: memref<3xi32, #tpu.memory_space<smem>>, %arg3: memref<3xi32, #tpu.memory_space<smem>>, %arg4: memref<3xi32, #tpu.memory_space<smem>>, %arg5: memref<3xi32, #tpu.memory_space<smem>>) -> (i32, i32, i32) {
    %0 = arith.index_cast %arg1 : i32 to index
    %1 = memref.load %arg3[%0] : memref<3xi32, #tpu.memory_space<smem>>
    %c0_i32 = arith.constant 0 : i32
    %c0_i32_0 = arith.constant 0 : i32
    %c0_i32_1 = arith.constant 0 : i32
    return %1, %c0_i32, %c0_i32_0 : i32, i32, i32
  }
  func.func @transform_5(%arg0: i32, %arg1: i32, %arg2: memref<3xi32, #tpu.memory_space<smem>>, %arg3: memref<3xi32, #tpu.memory_space<smem>>, %arg4: memref<3xi32, #tpu.memory_space<smem>>, %arg5: memref<3xi32, #tpu.memory_space<smem>>) -> (i32, i32, i32) {
    %0 = arith.index_cast %arg1 : i32 to index
    %1 = memref.load %arg3[%0] : memref<3xi32, #tpu.memory_space<smem>>
    %2 = arith.index_cast %arg1 : i32 to index
    %3 = memref.load %arg4[%2] : memref<3xi32, #tpu.memory_space<smem>>
    %c0_i32 = arith.constant 0 : i32
    %c0_i32_0 = arith.constant 0 : i32
    return %1, %c0_i32, %3 : i32, i32, i32
  }
  func.func @transform_6(%arg0: i32, %arg1: i32, %arg2: memref<3xi32, #tpu.memory_space<smem>>, %arg3: memref<3xi32, #tpu.memory_space<smem>>, %arg4: memref<3xi32, #tpu.memory_space<smem>>, %arg5: memref<3xi32, #tpu.memory_space<smem>>) -> (i32, i32, i32) {
    %0 = arith.index_cast %arg1 : i32 to index
    %1 = memref.load %arg3[%0] : memref<3xi32, #tpu.memory_space<smem>>
    %2 = arith.index_cast %arg1 : i32 to index
    %3 = memref.load %arg4[%2] : memref<3xi32, #tpu.memory_space<smem>>
    %c0_i32 = arith.constant 0 : i32
    %c0_i32_0 = arith.constant 0 : i32
    return %1, %c0_i32, %3 : i32, i32, i32
  }
  func.func @transform_7(%arg0: i32, %arg1: i32, %arg2: memref<3xi32, #tpu.memory_space<smem>>, %arg3: memref<3xi32, #tpu.memory_space<smem>>, %arg4: memref<3xi32, #tpu.memory_space<smem>>, %arg5: memref<3xi32, #tpu.memory_space<smem>>) -> (i32, i32) {
    %c0_i32 = arith.constant 0 : i32
    %c0_i32_0 = arith.constant 0 : i32
    %c0_i32_1 = arith.constant 0 : i32
    return %c0_i32, %c0_i32_0 : i32, i32
  }
  func.func @transform_8(%arg0: i32, %arg1: i32, %arg2: memref<3xi32, #tpu.memory_space<smem>>, %arg3: memref<3xi32, #tpu.memory_space<smem>>, %arg4: memref<3xi32, #tpu.memory_space<smem>>, %arg5: memref<3xi32, #tpu.memory_space<smem>>) -> (i32, i32) {
    %c0_i32 = arith.constant 0 : i32
    %c0_i32_0 = arith.constant 0 : i32
    %c0_i32_1 = arith.constant 0 : i32
    return %c0_i32, %c0_i32_0 : i32, i32
  }
  func.func @transform_9(%arg0: i32, %arg1: i32, %arg2: memref<3xi32, #tpu.memory_space<smem>>, %arg3: memref<3xi32, #tpu.memory_space<smem>>, %arg4: memref<3xi32, #tpu.memory_space<smem>>, %arg5: memref<3xi32, #tpu.memory_space<smem>>) -> (i32, i32, i32) {
    %0 = arith.index_cast %arg1 : i32 to index
    %1 = memref.load %arg3[%0] : memref<3xi32, #tpu.memory_space<smem>>
    %c0_i32 = arith.constant 0 : i32
    %c0_i32_0 = arith.constant 0 : i32
    return %1, %arg0, %c0_i32 : i32, i32, i32
  }
  func.func @transform_10(%arg0: i32, %arg1: i32, %arg2: memref<3xi32, #tpu.memory_space<smem>>, %arg3: memref<3xi32, #tpu.memory_space<smem>>, %arg4: memref<3xi32, #tpu.memory_space<smem>>, %arg5: memref<3xi32, #tpu.memory_space<smem>>) -> (i32, i32) {
    %c0_i32 = arith.constant 0 : i32
    %c0_i32_0 = arith.constant 0 : i32
    return %arg0, %c0_i32 : i32, i32
  }
}

</mosaic_0001>

<bundles_post_ra>
// kernel: tpu_custom_call.1
= control target key start
LH: loop header
LB: loop body
LE: loop exit
PB: predicated region body
PF: predicated region fallthrough
CT: control target
= control target key end

     0   :  { %s3091_s0 = inlined_call_operand.vmem [shape: s32[3], index: 0, kind: input, shape index: {}]   ;;  %s3092_s4 = inlined_call_operand.vmem [shape: bf16[16,128], index: 4, kind: input, shape index: {}]   ;;  %s3093_s5 = inlined_call_operand.vmem [shape: s32[16,1], index: 5, kind: input, shape index: {}]   ;;  %s3094_s6 = inlined_call_operand.vmem [shape: s32[16,1], index: 6, kind: input, shape index: {}]   ;;  %s3095_s7 = inlined_call_operand.hbm [shape: bf16[3,128,128], index: 7, kind: input, shape index: {}]   ;;  %s3096_s8 = inlined_call_operand.vmem [shape: f32[3,1,128], index: 8, kind: input, shape index: {}]   ;;  %s3097_s9 = inlined_call_operand.hbm [shape: bf16[3,128,128], index: 9, kind: input, shape index: {}]   ;;  %s3098_s10 = inlined_call_operand.vmem [shape: f32[3,1,128], index: 10, kind: input, shape index: {}]   ;;  %s3099_s11 = inlined_call_operand.hbm [shape: bf16[128,128], index: 11, kind: input, shape index: {}]   ;;  %s3100_s12 = inlined_call_operand.vmem [shape: f32[1,128], index: 12, kind: input, shape index: {}]   ;;  %s3101_s13 = inlined_call_operand.hbm [shape: f32[3,16,128], index: 13, kind: output, shape index: {0}]   ;;  %s3102_s14 = inlined_call_operand.hbm [shape: f32[16,128], index: 14, kind: output, shape index: {1}]   ;;  %s3103_s1 = inlined_call_operand.vmem [shape: s32[3], index: 1, kind: input, shape index: {}]   ;;  %s3104_s2 = inlined_call_operand.vmem [shape: s32[3], index: 2, kind: input, shape index: {}]   ;;  %s3105_s3 = inlined_call_operand.vmem [shape: s32[3], index: 3, kind: input, shape index: {}]  }
   0x1   :  { %3133 = sst [smem:[#allocation45_spill]] %s3092_s4  ;;  %s20_s15 = sshll.u32 %s3091_s0, 4  ;;  %s21_s15 = int_to_ptr.vmem [resolvable:$true] %s20_s15 }
   0x2   :  { %3134 = sst [smem:[#allocation46_spill]] %s3093_s5  ;;  %s24_s18 = sshll.u32 %s3103_s1, 4  ;;  %s25_s18 = int_to_ptr.vmem [resolvable:$true] %s24_s18 }
   0x3   :  { %3135 = sst [smem:[#allocation47_spill]] %s3094_s6  ;;  %s2072_s19 = scalar_lea.vmem %s21_s15, 16 }
   0x4   :  { %3136 = sst [smem:[#allocation48_spill]] %s3095_s7  ;;  %p2073_p0 = scmp.ne.s32.totalorder %s21_s15, %s2072_s19 }
   0x5   :  { %3137 = sst [smem:[#allocation49_spill]] %s3096_s8  ;;  %p2077_p1 = scmp.lt.s32.totalorder %s21_s15, %s21_s15 }
   0x6   :  { %3138 = sst [smem:[#allocation50_spill]] %s3098_s10  ;;  %p2078_p2 = scmp.lt.s32.totalorder %s2072_s19, %s2072_s19 }
   0x7   :  { %3139 = sst [smem:[#allocation51_spill]] %s3099_s11 }
   0x8   :  { %3140 = sst [smem:[#allocation52_spill]] %s3100_s12  ;;  %p2079_p3 = por %p2078_p2, %p2077_p1 }
   0x9   :  { %3141 = sst [smem:[#allocation53_spill]] %s3101_s13 }
   0xa   :  { %3142 = sst [smem:[#allocation54_spill]] %s3102_s14  ;;  %p2080_p4 = pnand %p2079_p3, %p2073_p0 }
   0xc   :  { %2083 = shalt.err (!%p2080_p4)  }
   0xd   :  { %s2370_s20 = smov [#allocation9]   ;;  %s2084_s21 = scalar_lea.vmem %s25_s18, 16 }
   0xe   :  { %23 = dma.vmem_to_smem %s21_s15, 16, %s2370_s20, [#allocation8] }
   0xf   :  { %p2085_p5 = scmp.ne.s32.totalorder %s25_s18, %s2084_s21  ;;  %p2089_p6 = scmp.lt.s32.totalorder %s25_s18, %s25_s18 }
  0x10   :  { %p2090_p7 = scmp.lt.s32.totalorder %s2084_s21, %s2084_s21 }
  0x12   :  { %p2091_p8 = por %p2090_p7, %p2089_p6 }
  0x14   :  { %p2092_p9 = pnand %p2091_p8, %p2085_p5 }
  0x16   :  { %2095 = shalt.err (!%p2092_p9)  }
  0x17   :  { %s2371_s0 = smov [#allocation10]   ;;  %s28_s23 = sshll.u32 %s3104_s2, 4  ;;  %s29_s23 = int_to_ptr.vmem [resolvable:$true] %s28_s23 }
  0x18   :  { %27 = dma.vmem_to_smem %s25_s18, 16, %s2371_s0, [#allocation8] }
  0x19   :  { %s32_s26 = sshll.u32 %s3105_s3, 4  ;;  %s2096_s27 = scalar_lea.vmem %s29_s23, 16  ;;  %s33_s26 = int_to_ptr.vmem [resolvable:$true] %s32_s26 }
  0x1a   :  { %p2097_p10 = scmp.ne.s32.totalorder %s29_s23, %s2096_s27  ;;  %p2101_p11 = scmp.lt.s32.totalorder %s29_s23, %s29_s23 }
  0x1b   :  { %p2102_p12 = scmp.lt.s32.totalorder %s2096_s27, %s2096_s27 }
  0x1d   :  { %p2103_p13 = por %p2102_p12, %p2101_p11 }
  0x1f   :  { %p2104_p0 = pnand %p2103_p13, %p2097_p10 }
  0x21   :  { %2107 = shalt.err (!%p2104_p0)  }
  0x22   :  { %s2372_s28 = smov [#allocation11]   ;;  %s2108_s29 = scalar_lea.vmem %s33_s26, 16 }
  0x23   :  { %31 = dma.vmem_to_smem %s29_s23, 16, %s2372_s28, [#allocation8] }
  0x24   :  { %p2109_p1 = scmp.ne.s32.totalorder %s33_s26, %s2108_s29  ;;  %p2113_p2 = scmp.lt.s32.totalorder %s33_s26, %s33_s26 }
  0x25   :  { %p2114_p3 = scmp.lt.s32.totalorder %s2108_s29, %s2108_s29 }
  0x27   :  { %p2115_p4 = por %p2114_p3, %p2113_p2 }
  0x29   :  { %p2116_p5 = pnand %p2115_p4, %p2109_p1 }
  0x2b   :  { %2119 = shalt.err (!%p2116_p5)  }
  0x2c   :  { %s2373_s2 = smov [#allocation12]  }
  0x2d   :  { %35 = dma.vmem_to_smem %s33_s26, 16, %s2373_s2, [#allocation8] }
  0x2e   :  { %2300 = dma.done.wait [#allocation8], 64 }
  0x2f   :  { %2301 = vsyncadd [#allocation8], 4294967232 }
  0x30   :  { %37 = sfence }
  0x31   :  { %38 = vsyncpa [#allocation14], 0 }
  0x32   :  { %40 = vsyncpa [#allocation14 + $0x1], 0 }
  0x33   :  { %41 = vsyncpa [#allocation17], 0 }
  0x34   :  { %43 = vsyncpa [#allocation17 + $0x1], 0 }
  0x35   :  { %44 = vsyncpa [#allocation15], 0 }
  0x36   :  { %46 = vsyncpa [#allocation15 + $0x1], 0 }
  0x37   :  { %47 = vsyncpa [#allocation21], 0  ;;  %s2482_s3 = smov 0   ;;  %s2484_s30 = smov 0  }
  0x38   :  { %s2486_s15 = smov 0   ;;  %s2488_s16 = smov 0  }
  0x39   :  { %s2490_s17 = smov 0   ;;  %s2492_s18 = smov 0  }
  0x3a   :  { %s2494_s19 = smov 0   ;;  %s2496_s20 = smov 0  }
  0x3b   :  { %s2498_s21 = smov 0   ;;  %s2500_s0 = smov 0  }
  0x3c   :  { %s2502_s1 = smov 0   ;;  %s2504_s22 = smov 0  }
  0x3d LB: > { %3143 = sst [smem:[#allocation35_spill]] %s2324_s3  ;;  %s2539_s23 = sadd.s32 4294967295, %s2368_s22   ;;  %s2368_s22 = sphi %s2504_s22, %s53_s22   ;;  %s2364_s1 = sphi %s2502_s1, %s3204_s1   ;;  %s2360_s0 = sphi %s2500_s0, %s3212_s0   ;;  %s2356_s21 = sphi %s2498_s21, %s3202_s21   ;;  %s2352_s20 = sphi %s2496_s20, %s3211_s20   ;;  %s2348_s19 = sphi %s2494_s19, %s3210_s19   ;;  %s2344_s18 = sphi %s2492_s18, %s3209_s18   ;;  %s2340_s17 = sphi %s2490_s17, %s3208_s17   ;;  %s2336_s16 = sphi %s2488_s16, %s3207_s16   ;;  %s2332_s15 = sphi %s2486_s15, %s3200_s15   ;;  %s2328_s30 = sphi %s2484_s30, %s3206_s30   ;;  %s2324_s3 = sphi %s2482_s3, %s3205_s3  }
  0x3e   : > { %3144 = sst [smem:[#allocation36_spill]] %s2332_s15  ;;  %s1666_s24 = sadd.s32 4294967294, %s2368_s22  }
  0x3f   : > { %3145 = sst [smem:[#allocation37_spill]] %s2356_s21  ;;  %s62_s25 = sadd.s32 1, %s2364_s1 }
  0x40   : > { %3146 = sst [smem:[#allocation38_spill]] %s2360_s0  ;;  %p165_p6 = scmp.ne.s32.totalorder %s2352_s20, %s2348_s19 }
  0x41   : > { %3147 = sst [smem:[#allocation39_spill]] %s2364_s1  ;;  %p63_p7 = scmp.ge.s32.totalorder %s62_s25, 3 }
  0x42   : > { %p3122_p8 = scmp.eq.s32.totalorder %s2539_s23, 0  ;;  %p225_p9 = scmp.ne.s32.totalorder %s2340_s17, %s2336_s16 }
  0x43   : > { %s309_s26 = sld [smem:[#allocation10 + %s2364_s1]]  ;;  %s3214_s25 = smov (%p63_p7, %s62_s25), 0 }
  0x44   : > { %3148 = sst [smem:[#allocation40_spill]] %s3214_s25  ;;  %p2551_p10 = por %p3122_p8, %p165_p6 }
  0x45   : > { %p2557_p11 = por %p225_p9, %p3122_p8  ;;  %s310_s29 = sld [smem:[#allocation10 + %s3214_s25]] }
  0x46   : > { %s3149_s27 = scalar_select %p2551_p10, 1, 0 }
  0x47   : > { %s3150_s28 = scalar_select %p2557_p11, 1, 0 }
  0x48   : > { %s316_s2 = sadd.s32 1, %s2332_s15  ;;  %p326_p12 = scmp.ne.s32.totalorder %s2332_s15, %s2328_s30 }
  0x49   : > { %p3110_p13 = scmp.eq.s32.totalorder %s2539_s23, 2  ;;  %p332_p0 = scmp.ne.s32.totalorder %s2328_s30, %s2324_s3 }
  0x4a   : > { %p333_p1 = scmp.eq.s32.totalorder %s1666_s24, 2  ;;  %p1667_p3 = scmp.ge.s32.totalorder %s2368_s22, 1 }
  0x4b   : > { %p2570_p2 = por %p3110_p13, %p326_p12  ;;  %p366_p5 = scmp.lt.s32.totalorder %s2368_s22, 4 }
  0x4c   : > { %p2575_p4 = por %p333_p1, %p332_p0  ;;  %s311_s13 = ssub.s32 %s309_s26, %s310_s29 }
  0x4d   : > { %s3151_s16 = scalar_select %p2570_p2, 1, 0 }
  0x4e   : > { %s3153_s19 = scalar_select %p2575_p4, 1, 0 }
  0x4f   : > { %3152 = sst [smem:[#allocation41_spill]] %s3151_s16  ;;  %p2580_p6 = pnand %p1667_p3, %p366_p5 }
  0x50   : > { %3154 = sst [smem:[#allocation42_spill]] %s3153_s19  ;;  %p314_p7 = scmp.eq.s32.totalorder %s311_s13, 0 }
  0x51   : > { %s3155_s14 = scalar_select %p2580_p6, 1, 0 }
  0x52   : > { %s2374_s3 = smov [#allocation18]   ;;  %p1852_p9 = pneg %p2580_p6 }
  0x53   : > { %s405_s24 = sshll.u32 %s2374_s3, 4  ;;  %s406_s24 = int_to_ptr.vmem [resolvable:$true] %s405_s24 }
  0x54   : > { %s2587_s12 = scalar_select %p314_p7, %s2332_s15, %s316_s2  }
  0x55   : > { %p1853_p12 = pnand %p1852_p9, %p3122_p8  ;;  %s2131_s16 = scalar_lea.vmem %s406_s24, 1024 }
  0x56   : > { %3156 = sst [smem:[#allocation43_spill]] %s2587_s12  ;;  %p2132_p1 = scmp.ne.s32.totalorder %s406_s24, %s2131_s16 }
  0x57   : > { %p2122_p0 = pneg %p1853_p12  ;;  %p2139_p3 = scmp.lt.s32.totalorder %s406_s24, %s406_s24 }
  0x58   : > { %p2140_p5 = scmp.lt.s32.totalorder %s2131_s16, %s2131_s16 }
  0x59   : > { %p2134_p13 = pnand %p2132_p1, %p2122_p0 }
  0x5a   : > { %p2141_p2 = por %p2140_p5, %p2139_p3 }
  0x5b   : > { %p2135_p4 = pneg %p2134_p13 }
  0x5d   : > { %p2142_p11 = pnand %p2141_p2, %p2135_p4 }
  0x5f   : > { %2145 = shalt.err (!%p2142_p11)
}
  0x60   : > { %s3115_s13 = smov 64   ;;  %s3117_s3 = smov 4  }
  0x61   : > { %s3157_s11 = sld [smem:[#allocation51_spill]]  ;;  %p159_p11 = scmp.ne.s32.totalorder %s2356_s21, %s2352_s20 }
  0x62   : > { %s147_s2 = sld [smem:[#allocation10 + %s2364_s1]]  ;;  %p160_p13 = scmp.eq.s32.totalorder %s2368_s22, 0 }
  0x63   : > { %s148_s16 = sld [smem:[#allocation10 + %s3214_s25]]  ;;  %s422_s12 = sand.u32 1, %s2356_s21  }
  0x64   : > { %s152_s15 = sadd.s32 1, %s2356_s21  ;;  %p161_p2 = por %p160_p13, %p159_p11 }
  0x65   : > { %s1673_s19 = sshll.u32 %s422_s12, 6  ;;  %p3123_p4 = scmp.lt.s32.totalorder %s2368_s22, 3 }
  0x66   : > { %s1832_s29 = scalar_select %p161_p2, [#allocation10], [#allocation22] }
  0x67   : > { %1855 = dma.hbm_to_vmem [thread:$0]  (!%p1853_p12), %s3157_s11, 1024, %s406_s24, [#allocation17], %s3115_s13, %s3115_s13, %s3117_s3  }
  0x68   : > { %p2609_p9 = pnand %p3123_p4, %p161_p2  ;;  %s3216_s29 = smov (!%p3123_p4, %s1832_s29), [#allocation26] }
  0x69   : > { %s149_s26 = ssub.s32 %s147_s2, %s148_s16  ;;  %s2622_s4 = sld [smem:[#allocation10 + %s2364_s1]] }
  0x6a   : > { %p150_p7 = scmp.eq.s32.totalorder %s149_s26, 0  ;;  %p219_p12 = scmp.ne.s32.totalorder %s2344_s18, %s2340_s17 }
  0x6b   : > { %s1833_s3 = scalar_select %p161_p2, %s2364_s1, 0 }
  0x6c   : > { %s2614_s13 = scalar_select %p150_p7, %s2356_s21, %s152_s15  }
  0x6d   : > { %s3218_s3 = smov (!%p3123_p4, %s1833_s3), 0  ;;  %s426_s2 = scalar_lea.vmem [#allocation13], %s1673_s19 }
  0x6e   : > { %3159 = sst [smem:[#allocation44_spill]] %s2614_s13  ;;  %s434_s16 = sshll.u32 %s426_s2, 4  ;;  %s2635_s16 = int_to_ptr.vmem [resolvable:$true] %s434_s16 }
  0x6f   : > { %s427_s11 = sld [smem:[%s3216_s29 + %s3218_s3]]  ;;  %p2639_p0 = por %p219_p12, %p160_p13 }
  0x70   : > { %s2627_s26 = sld [smem:[#allocation11 + %s2364_s1]]  ;;  %p2148_p5 = pneg %p2609_p9 }
  0x71   : > { %s2630_s10 = sld [smem:[#allocation10 + %s3214_s25]]  ;;  %p2652_p1 = pnand %p3123_p4, %p2639_p0 }
  0x72   : > { %s2633_s8 = sld [smem:[#allocation11 + %s3214_s25]]  ;;  %s2656_s25 = scalar_lea.sflag [#allocation14], %s422_s12 }
  0x73   : > { %s3160_s15 = scalar_select %p2639_p0, 1, 0 }
  0x74   : > { %s3161_s7 = sld [smem:[#allocation48_spill]] }
  0x75   : > { %s1734_s3 = sshll.u32 %s427_s11, 10 }
  0x76   : > { %s3162_s2 = scalar_select %p2652_p1, 1, 0 }
  0x7a   : > { %s2646_s19 = scalar_lea.hbm %s3161_s7, %s1734_s3  ;;  %s2151_s3 = scalar_lea.hbm %s3161_s7, 3072 }
  0x7b   : > { %s2146_s21 = scalar_lea.hbm %s2646_s19, 1024  ;;  %p2152_p2 = scmp.lt.s32.totalorder %s2646_s19, %s3161_s7 }
  0x7c   : > { %p2147_p3 = scmp.ne.s32.totalorder %s2646_s19, %s2146_s21  ;;  %p2153_p7 = scmp.lt.s32.totalorder %s2151_s3, %s2146_s21 }
  0x7e   : > { %p2149_p11 = pnand %p2148_p5, %p2147_p3  ;;  %p2154_p12 = por %p2153_p7, %p2152_p2 }
  0x80   : > { %p2150_p13 = pneg %p2149_p11 }
  0x82   : > { %p2155_p8 = pnand %p2154_p12, %p2150_p13 }
  0x84   : > { %2158 = shalt.err (!%p2155_p8)
}
  0x85   : > { %s2159_s12 = scalar_lea.vmem %s2635_s16, 1024  ;;  %s2377_s6 = smov [#allocation13]  }
  0x86   : > { %p2160_p4 = scmp.ne.s32.totalorder %s2635_s16, %s2159_s12  ;;  %s2164_s0 = sshll.u32 %s2377_s6, 4  ;;  %s2165_s0 = int_to_ptr.vmem [resolvable:$false] %s2164_s0 }
  0x87   : > { %s2166_s11 = scalar_lea.vmem %s2165_s0, 2048  ;;  %p2167_p11 = scmp.lt.s32.totalorder %s2635_s16, %s2165_s0 }
  0x88   : > { %p2162_p10 = pnand %p2160_p4, %p2148_p5  ;;  %p2168_p6 = scmp.lt.s32.totalorder %s2166_s11, %s2159_s12 }
  0x8a   : > { %p2163_p3 = pneg %p2162_p10  ;;  %p2169_p1 = por %p2168_p6, %p2167_p11 }
  0x8c   : > { %p2170_p0 = pnand %p2169_p1, %p2163_p3 }
  0x8e   : > { %2173 = shalt.err (!%p2170_p0)
}
  0x8f   : > { %s3163_s5 = smov 4   ;;  %s3164_s21 = smov 64  }
  0x90   : > { %1861 = dma.hbm_to_vmem [thread:$0]  (!%p2609_p9), %s2646_s19, 1024, %s2635_s16, %s2656_s25, %s3164_s21, %s3164_s21, %s3163_s5  }
  0x91   : > { %s207_s6 = ssub.s32 %s2622_s4, %s2630_s10  ;;  %s208_s0 = ssub.s32 %s2627_s26, %s2633_s8 }
  0x92   : > { %s212_s24 = sadd.s32 1, %s2344_s18  ;;  %s209_s13 = sor.u32 %s208_s0, %s207_s6 }
  0x93   : > { %p210_p8 = scmp.eq.s32.totalorder %s209_s13, 0  ;;  %s454_s3 = sand.u32 1, %s2344_s18  }
  0x94   : > { %p3165_p10 = scmp.ne.s32.totalorder %s3160_s15, 0  ;;  %p3166_p6 = scmp.lt.s32.totalorder %s2368_s22, 3 }
  0x95   : > { %s2689_s12 = scalar_select %p210_p8, %s2344_s18, %s212_s24  }
  0x96   : > { %s1835_s29 = scalar_select %p3165_p10, [#allocation10], [#allocation23] }
  0x97   : > { %s1836_s11 = scalar_select %p3165_p10, %s2364_s1, 0 }
  0x98   : > { %s3220_s29 = smov (!%p3166_p6, %s1835_s29), [#allocation27]  ;;  %p3167_p4 = pmov %p3166_p6 }
  0x99   : > { %s1837_s7 = scalar_select %p3165_p10, [#allocation11], [#allocation24] }
  0x9a   : > { %s3222_s11 = smov (!%p3167_p4, %s1836_s11), 0  ;;  %s1676_s4 = sshll.u32 %s454_s3, 6 }
  0x9b   : > { %s457_s10 = sld [smem:[%s3220_s29 + %s3222_s11]]  ;;  %p3168_p9 = pmov %p3167_p4 }
  0x9c   : > { %s452_s25 = sand.u32 1, %s2368_s22   ;;  %s456_s26 = scalar_lea.vmem [#allocation16], %s1676_s4 }
  0x9d   : > { %s3224_s7 = smov (!%p3168_p9, %s1837_s7), [#allocation28]  ;;  %s466_s19 = sshll.u32 %s456_s26, 4  ;;  %s2703_s19 = int_to_ptr.vmem [resolvable:$true] %s466_s19 }
  0x9e   : > { %s458_s8 = sld [smem:[%s3224_s7 + %s3222_s11]]  ;;  %s2710_s15 = scalar_lea.sflag [#allocation17], %s452_s25 }
  0x9f   : > { %p3169_p1 = scmp.ne.s32.totalorder %s3162_s2, 0  ;;  %s2179_s11 = scalar_lea.hbm %s3097_s9, 3072 }
  0xa1   : > { %s1677_s16 = sshll.u32 %s457_s10, 4  ;;  %p2176_p5 = pneg %p3169_p1 }
  0xa4   : > { %s463_s6 = sadd.s32 %s1677_s16, %s458_s8 }
  0xa5   : > { %s1678_s0 = sshll.u32 %s463_s6, 6 }
  0xa6   : > { %s2708_s1 = scalar_lea.hbm %s3097_s9, %s1678_s0 }
  0xa7   : > { %s2174_s3 = scalar_lea.hbm %s2708_s1, 1024  ;;  %p2180_p7 = scmp.lt.s32.totalorder %s2708_s1, %s3097_s9 }
  0xa8   : > { %p2175_p0 = scmp.ne.s32.totalorder %s2708_s1, %s2174_s3  ;;  %p2181_p12 = scmp.lt.s32.totalorder %s2179_s11, %s2174_s3 }
  0xaa   : > { %p2177_p13 = pnand %p2176_p5, %p2175_p0  ;;  %p2182_p3 = por %p2181_p12, %p2180_p7 }
  0xac   : > { %p2178_p2 = pneg %p2177_p13 }
  0xae   : > { %p2183_p11 = pnand %p2182_p3, %p2178_p2 }
  0xb0   : > { %2186 = shalt.err (!%p2183_p11)
}
  0xb1   : > { %s2187_s8 = scalar_lea.vmem %s2703_s19, 1024  ;;  %s2378_s25 = smov [#allocation16]  }
  0xb2   : > { %p2188_p8 = scmp.ne.s32.totalorder %s2703_s19, %s2187_s8  ;;  %s2192_s16 = sshll.u32 %s2378_s25, 4  ;;  %s2193_s16 = int_to_ptr.vmem [resolvable:$false] %s2192_s16 }
  0xb3   : > { %s2194_s26 = scalar_lea.vmem %s2193_s16, 2048  ;;  %p2195_p4 = scmp.lt.s32.totalorder %s2703_s19, %s2193_s16 }
  0xb4   : > { %p2190_p10 = pnand %p2188_p8, %p2176_p5  ;;  %p2196_p9 = scmp.lt.s32.totalorder %s2194_s26, %s2187_s8 }
  0xb6   : > { %p2191_p6 = pneg %p2190_p10  ;;  %p2197_p0 = por %p2196_p9, %p2195_p4 }
  0xb8   : > { %p2198_p13 = pnand %p2197_p0, %p2191_p6 }
  0xba   : > { %2201 = shalt.err (!%p2198_p13)
}
  0xbb   : > { %1868 = dma.hbm_to_vmem [thread:$0]  (!%p3169_p1), %s2708_s1, 1024, %s2703_s19, %s2710_s15, %s3164_s21, %s3164_s21, %s3163_s5  }
  0xbc   : > { %p3170_p5 = scmp.ne.s32.totalorder %s3155_s14, 0 }
  0xbd   : > { %s493_s6 = sand.u32 (!%p3170_p5), 1, %s2352_s20   ;;  %p3171_p2 = scmp.ne.s32.totalorder (!%p3170_p5), %s3149_s27, 0 }
  0xbe   : > { %491 = sbr.rel (%p3170_p5) target bundleno = 2631 (0xa47), region = 56  ;;  %s1680_s0 = sshll.u32 (!%p3170_p5), %s493_s6, 6 }
  0xbf   : > { %s494_s24 = scalar_lea.sflag (!%p3170_p5), [#allocation14], %s493_s6  ;;  %s2737_s13 = scalar_lea.vmem (!%p3170_p5), [#allocation13], %s1680_s0 }
  0xc3   : > { %2303 = dma.done.wait (%p3171_p2), %s494_s24, 1024  }
  0xc4   : > { %2305 = vsyncadd (%p3171_p2), %s494_s24, 4294966272  ;;  %s502_s2 = sand.u32 1, %s2539_s23   ;;  %s504_s1 = sand.u32 1, %s2340_s17  }
  0xc5   : > { %s1681_s5 = sshll.u32 %s504_s1, 6  ;;  %s503_s14 = scalar_lea.sflag [#allocation17], %s502_s2 }
  0xc6   : > { %s2745_s21 = scalar_lea.vmem [#allocation16], %s1681_s5  ;;  %p3172_p1 = scmp.ne.s32.totalorder %s3150_s28, 0 }
  0xc8   : > { %2307 = dma.done.wait (%p3172_p1), %s503_s14, 1024  }
  0xc9   : > { %2309 = vsyncadd (%p3172_p1), %s503_s14, 4294966272  ;;  %p3173_p7 = scmp.eq.s32.totalorder %s2539_s23, 0 }
  0xcb   : > { %2311 = dma.done.wait (%p3173_p7), [#allocation17], 1024   ;;  %p3174_p12 = pmov %p3173_p7 }
  0xcc   : > { %s3175_s27 = sld [smem:[#allocation38_spill]]  ;;  %s574_s19 = sand.u32 1, %s2328_s30  }
  0xcd   : > { %2313 = vsyncadd (%p3174_p12), [#allocation17], 4294966272  ;;  %s1683_s3 = sshll.u32 %s574_s19, 4  ;;  %s3176_s25 = sld [smem:[#allocation47_spill]] }
  0xce   : > { %s3177_s24 = sld [smem:[#allocation46_spill]]  ;;  %s2802_s2 = scalar_lea.vmem [#allocation19], %s1683_s3 }
  0xcf   : > { %s3179_s6 = sld [smem:[#allocation50_spill]] }
  0xd2   : > { %s598_s15 = sld [smem:[#allocation10 + %s3175_s27]] }
  0xd3   : > { %s605_s28 = sld [smem:[#allocation10 + %s3175_s27]]  ;;  %v625_v0 = vld [vmem:[%s3176_s25] sm:$0xff]  ;;  %v626_v1 = vld [vmem:[%s3176_s25 + $0x8] sm:$0xff] }
  0xd4   : > { %s606_s7 = sld [smem:[#allocation11 + %s3175_s27]]  ;;  %v630_v2 = vld [vmem:[%s3177_s24] sm:$0xff]  ;;  %v631_v3 = vld [vmem:[%s3177_s24 + $0x8] sm:$0xff] }
  0xd5   : > { %s2762_s29 = sld [smem:[#allocation10 + %s3175_s27]] }
  0xd6   : > { %s2765_s11 = sld [smem:[#allocation11 + %s3175_s27]] }
  0xd7   : > { %s2768_s4 = sld [smem:[#allocation12 + %s3175_s27]] }
  0xd8   : > { %p599_p3 = scmp.lt.s32.totalorder %s598_s15, 2  ;;  %s3178_s27 = sld [smem:[#allocation49_spill]] }
  0xd9   : > { %p607_p11 = scmp.lt.s32.totalorder %s605_s28, 2 }
  0xda   : > { %s3226_s15 = smov (!%p599_p3, %s598_s15), 2  ;;  %p609_p8 = scmp.lt.s32.totalorder %s606_s7, 0 }
  0xdb   : > { %s3228_s28 = smov (!%p607_p11, %s605_s28), 2  ;;  %v627_v4 = vstv %s2762_s29  ;;  %s2790_s8 = sld [smem:[#allocation9 + %s2762_s29]] }
  0xdc   : > { %vm628_vm0 = vcmp.eq.s32.totalorder %v625_v0, %v627_v4  ;;  %vm629_vm1 = vcmp.eq.s32.totalorder %v626_v1, %v627_v4  ;;  %p622_p10 = scmp.eq.s32.totalorder %s2765_s11, 0  ;;  %s3230_s7 = smov (!%p609_p8, %s606_s7), 0 }
  0xdd   : > { %v2793_v5 = vsel %vm628_vm0, %v630_v2, 4294967295  ;;  %v2795_v6 = vsel %vm629_vm1, %v631_v3, 4294967295  ;;  %s611_s25 = sadd.s32 %s3230_s7, %s3228_s28  ;;  %p1684_p6 = scmp.ne.s32.totalorder %s2765_s11, 0 }
  0xde   : > { %s601_s10 = scalar_lea.vmem %s3178_s27, %s3226_s15  ;;  %s2800_s0 = scalar_lea.vmem %s3179_s6, %s611_s25 }
  0xdf   : > { %636 = sbr.rel (%p1684_p6) target bundleno = 621 (0x26d), region = 72  ;;  %s3180_s7 = sld [smem:[#allocation45_spill]] (!%p1684_p6) }
  0xe4   : > { %vm637_vm2 = vcmask 7168   ;;  %v2379_v7 = vmov -1e+30   ;;  %v2380_v8 = vmov 0.0   ;;  %v1997_v9 = vld [vmem:[%s2737_s13 + $0x38] sm:$0xff]   ;;  %vm2381_vm3 = vmmov 0  }
  0xe5   : > { %638 = vst.msk [vmem:[#allocation3] sm:$0xff] %vm637_vm2, %v2379_v7  ;;  %639 = vst.msk [vmem:[#allocation3 + $0x8] sm:$0xff] %vm637_vm2, %v2379_v7  ;;  %1770 = vmatprep.subr.bf16.mxu0 %v2380_v8  ;;  %1786 = vmatprep.mubr.msk.bf16.mxu0 %vm2381_vm3, %v2380_v8  ;;  %v1998_v10 = vld [vmem:[%s2737_s13 + $0x30] sm:$0xff]   ;;  %v1999_v11 = vld [vmem:[%s2737_s13 + $0x28] sm:$0xff]  }
  0xe6   : > { %640 = vst.msk [vmem:[#allocation4] sm:$0xff] %vm637_vm2, %v2380_v8  ;;  %641 = vst.msk [vmem:[#allocation4 + $0x8] sm:$0xff] %vm637_vm2, %v2380_v8  ;;  %1771 = vmatpush3.bf16.msra.mxu0 %v1997_v9  ;;  %v2000_v12 = vld [vmem:[%s2737_s13 + $0x20] sm:$0xff]   ;;  %v2001_v13 = vld [vmem:[%s2737_s13 + $0x18] sm:$0xff]  }
  0xe7   : > { %642 = vst.msk [vmem:[#allocation5] sm:$0xff] %vm637_vm2, %v2380_v8  ;;  %643 = vst.msk [vmem:[#allocation5 + $0x8] sm:$0xff] %vm637_vm2, %v2380_v8  ;;  %1772 = vmatprep.subr.bf16.mxu0 %v2380_v8  ;;  %v2002_v14 = vld [vmem:[%s2737_s13 + $0x10] sm:$0xff]   ;;  %v2003_v15 = vld [vmem:[%s2737_s13 + $0x8] sm:$0xff]  }
  0xe8   : > { %644 = vst [vmem:[#allocation7] sm:$0xff] %v2379_v7  ;;  %645 = vst [vmem:[#allocation7 + $0x8] sm:$0xff] %v2379_v7  ;;  %v2004_v16 = vld [vmem:[%s2737_s13] sm:$0xff]   ;;  %v2005_v17 = vld [vmem:[%s3180_s7] sm:$0xff]  }
  0xe9   : > { %v1685_v18 = vld [vmem:[%s601_s10] ss:$0 sm:$0xff] }
  0xea   : > { %1773 = vmatpush3.bf16.msra.mxu0 %v1998_v10 }
  0xeb   : > { %1774 = vmatprep.subr.bf16.mxu0 %v2380_v8 }
  0xee   : > { %1775 = vmatpush3.bf16.msra.mxu0 %v1999_v11 }
  0xef   : > { %1776 = vmatprep.subr.bf16.mxu0 %v2380_v8 }
  0xf2   : > { %1777 = vmatpush3.bf16.msra.mxu0 %v2000_v12 }
  0xf3   : > { %1778 = vmatprep.subr.bf16.mxu0 %v2380_v8 }
  0xf6   : > { %1779 = vmatpush3.bf16.msra.mxu0 %v2001_v13 }
  0xf7   : > { %1780 = vmatprep.subr.bf16.mxu0 %v2380_v8 }
  0xfa   : > { %1781 = vmatpush3.bf16.msra.mxu0 %v2002_v14 }
  0xfb   : > { %1782 = vmatprep.subr.bf16.mxu0 %v2380_v8 }
  0xfe   : > { %1783 = vmatpush3.bf16.msra.mxu0 %v2003_v15 }
  0xff   : > { %1784 = vmatprep.subr.bf16.mxu0 %v2380_v8 }
 0x102   : > { %1785 = vmatpush3.bf16.msra.mxu0 %v2004_v16 }
 0x105   : > { %1787 = vmatmul.mubr.bf16.vlgmr.msra.gmra.mxu0 %v2005_v17 }
 0x1c5   : > { %v759_v19 = vpop.f32.mrf.mxu0 }
 0x1c6   : > { %v760_v20 = vadd.f32 %v1685_v18, %v759_v19 }
 0x1c7   : > { %v1788_v21 = vpop.f32.mrf.mxu0 }
 0x1c8   : > { %v766_v22 = vmul.f32 %v760_v20, %v760_v20 }
 0x1c9   : > { %v762_v23 = vpop.f32.mrf.mxu0 }
 0x1ca   : > { %v763_v24 = vadd.f32 %v1685_v18, %v762_v23  ;;  %768 = vadd.xlane.f32.xlu0 %v766_v22 }
 0x1cb   : > { %v1789_v25 = vpop.f32.mrf.mxu0 }
 0x1cc   : > { %v767_v26 = vmul.f32 %v763_v24, %v763_v24 }
 0x1ce   : > { %770 = vadd.xlane.f32.xlu0 %v767_v26 }
 0x253   : > { %v769_v27 = vpop.xlane.xlu0 %768 }
 0x254   : > { %v772_v28 = vadd.f32 1e-24, %v769_v27 }
 0x256   : > { %2006 = vrsqrt.f32 %v772_v28 }
 0x257   : > { %v771_v29 = vpop.xlane.xlu0 %770 }
 0x258   : > { %v773_v30 = vadd.f32 1e-24, %v771_v29 }
 0x25a   : > { %2008 = vrsqrt.f32 %v773_v30 }
 0x263   : > { %v2007_v31 = vpop.eup %2006 }
 0x264   : > { %v776_v33 = vmul.f32 %v2007_v31, %v760_v20 }
 0x267   : > { %v2009_v32 = vpop.eup %2008 }
 0x268   : > { %v777_v34 = vmul.f32 %v2009_v32, %v763_v24 }
 0x26a   : > { %v1741_v35 = vpack.c.bf16 %v777_v34, %v776_v33 }
 0x26c   : > { %1742 = vst [vmem:[#allocation2] sm:$0xff] %v1741_v35  }
 0x26d PF: > { %p788_p4 = scmp.eq.s32.totalorder %s2762_s29, 0 }
 0x26f   : > { %p789_p9 = pnand %p788_p4, %p622_p10 }
 0x270   : > { %s3182_s29 = sld [smem:[#allocation47_spill]] (!%p789_p9) }
 0x271   : > { %792 = sbr.rel (%p789_p9) target bundleno = 1178 (0x49a), region = 76  ;;  %s3183_s26 = sld [smem:[#allocation45_spill]] (!%p789_p9) }
 0x272   : > { %s3184_s28 = sld [smem:[#allocation52_spill]] (!%p789_p9) }
 0x276   : > { %v2012_v36 = vld [vmem:[#allocation18 + $0x38] sm:$0xff]   ;;  %v2382_v37 = vmov 0.0   ;;  %v2013_v38 = vld [vmem:[#allocation18 + $0x30] sm:$0xff]   ;;  %vm2383_vm4 = vmmov 0   ;;  %v2384_v39 = vmov 0   ;;  %v2014_v40 = vld [vmem:[#allocation18 + $0x28] sm:$0xff]   ;;  %v913_v49 = vlaneseq }
 0x277   : > { %1790 = vmatprep.subr.bf16.mxu0 %v2382_v37  ;;  %1806 = vmatprep.mubr.msk.bf16.mxu0 %vm2383_vm4, %v2382_v37  ;;  %v934_v41 = vld [vmem:[%s3182_s29] sm:$0xff]  ;;  %v2015_v42 = vld [vmem:[#allocation18 + $0x20] sm:$0xff]   ;;  %v935_v43 = vld [vmem:[%s3182_s29 + $0x8] sm:$0xff]  ;;  %vm958_vm8 = vcmask 7168  }
 0x278   : > { %1791 = vmatpush3.bf16.msra.mxu0 %v2012_v36  ;;  %2010 = vset.pattern.permute.xlu1 %v2384_v39  ;;  %v2016_v44 = vld [vmem:[#allocation18 + $0x18] sm:$0xff]   ;;  %v2017_v45 = vld [vmem:[#allocation18 + $0x10] sm:$0xff]   ;;  %v2018_v46 = vld [vmem:[#allocation18 + $0x8] sm:$0xff]   ;;  %v914_v50 = vand.u32 127, %v913_v49 }
 0x279   : > { %1792 = vmatprep.subr.bf16.mxu0 %v2382_v37  ;;  %2011 = vset.pattern.permute.xlu0 %v2384_v39  ;;  %v2019_v47 = vld [vmem:[#allocation18] sm:$0xff]   ;;  %v2020_v48 = vld [vmem:[%s3183_s26] sm:$0xff]  }
 0x27a   : > { %937 = vperm.xlu1 %2010, %v934_v41   ;;  %v1697_v51 = vld [vmem:[%s3184_s28] ss:$0 sm:$0xff]  ;;  %vm915_vm5 = vcmp.lt.s32.totalorder %v914_v50, 3 }
 0x27c   : > { %1793 = vmatpush3.bf16.msra.mxu0 %v2013_v38 }
 0x27d   : > { %1794 = vmatprep.subr.bf16.mxu0 %v2382_v37 }
 0x27e   : > { %940 = vperm.xlu1 %2010, %v935_v43  }
 0x280   : > { %1795 = vmatpush3.bf16.msra.mxu0 %v2014_v40 }
 0x281   : > { %1796 = vmatprep.subr.bf16.mxu0 %v2382_v37 }
 0x284   : > { %1797 = vmatpush3.bf16.msra.mxu0 %v2015_v42 }
 0x285   : > { %1798 = vmatprep.subr.bf16.mxu0 %v2382_v37 }
 0x288   : > { %1799 = vmatpush3.bf16.msra.mxu0 %v2016_v44 }
 0x289   : > { %1800 = vmatprep.subr.bf16.mxu0 %v2382_v37 }
 0x28c   : > { %1801 = vmatpush3.bf16.msra.mxu0 %v2017_v45 }
 0x28d   : > { %1802 = vmatprep.subr.bf16.mxu0 %v2382_v37 }
 0x290   : > { %1803 = vmatpush3.bf16.msra.mxu0 %v2018_v46 }
 0x291   : > { %1804 = vmatprep.subr.bf16.mxu0 %v2382_v37 }
 0x294   : > { %1805 = vmatpush3.bf16.msra.mxu0 %v2019_v47 }
 0x297   : > { %1807 = vmatmul.mubr.bf16.vlgmr.msra.gmra.mxu0 %v2020_v48 }
 0x2f5   : > { %v938_v4 = vpop.permute.xlu1 %937 }
 0x2f6   : > { %vm942_vm6 = vcmp.eq.s32.totalorder %v914_v50, %v938_v4 }
 0x2f9   : > { %v941_v8 = vpop.permute.xlu1 %940 }
 0x2fa   : > { %vm943_vm7 = vcmp.eq.s32.totalorder %v914_v50, %v941_v8 }
 0x357   : > { %v906_v52 = vpop.f32.mrf.mxu0 }
 0x358   : > { %v907_v53 = vadd.f32 %v1697_v51, %v906_v52 }
 0x359   : > { %v1808_v54 = vpop.f32.mrf.mxu0 }
 0x35a   : > { %v961_v55 = vsel %vm915_vm5, %v907_v53, 0.0  ;;  %v918_v56 = vsel %vm915_vm5, %v907_v53, -1e+30 }
 0x35b   : > { %963 = vst [vmem:[#allocation20] sm:$0xff] %v961_v55  ;;  %920 = vmax.xlane.f32.xlu0 %v918_v56  ;;  %v909_v57 = vpop.f32.mrf.mxu0  ;;  %v944_v10 = vsel %vm942_vm6, %v918_v56, 0.0 }
 0x35c   : > { %v910_v58 = vadd.f32 %v1697_v51, %v909_v57 }
 0x35d   : > { %v1809_v59 = vpop.f32.mrf.mxu0 }
 0x35e   : > { %v962_v60 = vsel %vm915_vm5, %v910_v58, 0.0  ;;  %v919_v61 = vsel %vm915_vm5, %v910_v58, -1e+30 }
 0x35f   : > { %964 = vst [vmem:[#allocation20 + $0x8] sm:$0xff] %v962_v60  ;;  %922 = vmax.xlane.f32.xlu0 %v919_v61  ;;  %v945_v11 = vsel %vm943_vm7, %v919_v61, 0.0 }
 0x3e4   : > { %v921_v62 = vpop.xlane.xlu0 %920 }
 0x3e5   : > { %v924_v63 = vsub.f32 %v918_v56, %v921_v62 }
 0x3e7   : > { %v926_v0 = vmul.f32 1.442695, %v924_v63 }
 0x3e8   : > { %v923_v1 = vpop.xlane.xlu0 %922 }
 0x3e9   : > { %2021 = vpow2.f32 %v926_v0  ;;  %v925_v2 = vsub.f32 %v919_v61, %v923_v1 }
 0x3eb   : > { %v928_v3 = vmul.f32 1.442695, %v925_v2 }
 0x3ed   : > { %2023 = vpow2.f32 %v928_v3 }
 0x3f6   : > { %v2022_v7 = vpop.eup %2021 }
 0x3f7   : > { %930 = vadd.xlane.f32.xlu0 %v2022_v7 }
 0x3fa   : > { %v2024_v9 = vpop.eup %2023 }
 0x3fb   : > { %946 = vadd.xlane.f32.xlu0 %v944_v10  ;;  %932 = vadd.xlane.f32.xlu1 %v2024_v9 }
 0x3ff   : > { %948 = vadd.xlane.f32.xlu0 %v945_v11 }
 0x480   : > { %v931_v12 = vpop.xlane.xlu0 %930 }
 0x481   : > { %2025 = vlog2.f32 %v931_v12 }
 0x484   : > { %v933_v13 = vpop.xlane.xlu1 %932  ;;  %v947_v16 = vpop.xlane.xlu0 %946 }
 0x485   : > { %2027 = vlog2.f32 %v933_v13 }
 0x488   : > { %v949_v22 = vpop.xlane.xlu0 %948 }
 0x48e   : > { %v2026_v14 = vpop.eup %2025 }
 0x48f   : > { %v951_v15 = vmul.f32 0.6931472, %v2026_v14 }
 0x491   : > { %v954_v17 = vadd.f32 %v951_v15, %v921_v62 }
 0x492   : > { %v2028_v18 = vpop.eup %2027 }
 0x493   : > { %v953_v19 = vmul.f32 0.6931472, %v2028_v18  ;;  %v956_v20 = vsub.f32 %v954_v17, %v947_v16 }
 0x495   : > { %959 = vst.msk [vmem:[#allocation6] sm:$0xff] %vm958_vm8, %v956_v20  ;;  %v955_v21 = vadd.f32 %v953_v19, %v923_v1 }
 0x497   : > { %v957_v23 = vsub.f32 %v955_v21, %v949_v22 }
 0x499   : > { %960 = vst.msk [vmem:[#allocation6 + $0x8] sm:$0xff] %vm958_vm8, %v957_v23 }
 0x49a PF: > { %v2031_v24 = vld [vmem:[%s2745_s21 + $0x38] sm:$0xff]   ;;  %v2385_v25 = vmov 0.0   ;;  %v2032_v26 = vld [vmem:[%s2745_s21 + $0x30] sm:$0xff]   ;;  %vm2386_vm9 = vmmov 0   ;;  %v2033_v27 = vld [vmem:[%s2745_s21 + $0x28] sm:$0xff]   ;;  %v1087_v36 = vlaneseq  ;;  %s1717_s7 = sshll.u32 %s2765_s11, 7  ;;  %v1092_v40 = vstv %s2790_s8 }
 0x49b   : > { %1810 = vmatprep.subr.bf16.mxu0 %v2385_v25  ;;  %1826 = vmatprep.mubr.msk.bf16.mxu0 %vm2386_vm9, %v2385_v25  ;;  %v2034_v28 = vld [vmem:[%s2745_s21 + $0x20] sm:$0xff]   ;;  %v2035_v29 = vld [vmem:[%s2745_s21 + $0x18] sm:$0xff]   ;;  %v2036_v30 = vld [vmem:[%s2745_s21 + $0x10] sm:$0xff]   ;;  %v1090_v38 = vstv %s1717_s7  ;;  %v2387_v51 = vmov 0   ;;  %vm2388_vm3 = vmmov 1   ;;  %p1718_p0 = scmp.ne.s32.totalorder %s2768_s4, 1 }
 0x49c   : > { %1811 = vmatpush3.bf16.msra.mxu0 %v2031_v24  ;;  %v2037_v31 = vld [vmem:[%s2745_s21 + $0x8] sm:$0xff]   ;;  %v2038_v32 = vld [vmem:[%s2745_s21] sm:$0xff]   ;;  %v1173_v34 = vld [vmem:[#allocation7] sm:$0xff]  ;;  %v2845_v37 = vand.u32 127, %v1087_v36  ;;  %2030 = vset.pattern.permute.xlu1 %v2387_v51 }
 0x49d   : > { %1812 = vmatprep.subr.bf16.mxu0 %v2385_v25  ;;  %v2039_v33 = vld [vmem:[#allocation2] sm:$0xff]   ;;  %1179 = vmax.xlane.f32.xlu1 %v1173_v34  ;;  %v1174_v35 = vld [vmem:[#allocation7 + $0x8] sm:$0xff]  ;;  %v2899_v20 = vld [vmem:[#allocation3] sm:$0xff] }
 0x49e   : > { %v2848_v39 = vadd.s32 %v1090_v38, %v2845_v37  ;;  %v1716_v41 = vld [vmem:[%s2800_s0] ss:$0 sm:$0xff]  ;;  %2029 = vset.pattern.permute.xlu0 %v2387_v51  ;;  %vm1185_vm15 = vcmp.eq.s32.totalorder %v2845_v37, 0  ;;  %vm1208_vm0 = vcmp.eq.s32.totalorder %v2845_v37, 1  ;;  %v2901_v21 = vld [vmem:[#allocation3 + $0x8] sm:$0xff] }
 0x4a0   : > { %1813 = vmatpush3.bf16.msra.mxu0 %v2032_v26  ;;  %vm2853_vm10 = vcmp.lt.s32.totalorder %v2848_v39, %v1092_v40 }
 0x4a1   : > { %1814 = vmatprep.subr.bf16.mxu0 %v2385_v25  ;;  %1181 = vmax.xlane.f32.xlu1 %v1174_v35 }
 0x4a4   : > { %1815 = vmatpush3.bf16.msra.mxu0 %v2033_v27 }
 0x4a5   : > { %1816 = vmatprep.subr.bf16.mxu0 %v2385_v25 }
 0x4a8   : > { %1817 = vmatpush3.bf16.msra.mxu0 %v2034_v28 }
 0x4a9   : > { %1818 = vmatprep.subr.bf16.mxu0 %v2385_v25 }
 0x4ac   : > { %1819 = vmatpush3.bf16.msra.mxu0 %v2035_v29 }
 0x4ad   : > { %1820 = vmatprep.subr.bf16.mxu0 %v2385_v25 }
 0x4b0   : > { %1821 = vmatpush3.bf16.msra.mxu0 %v2036_v30 }
 0x4b1   : > { %1822 = vmatprep.subr.bf16.mxu0 %v2385_v25 }
 0x4b4   : > { %1823 = vmatpush3.bf16.msra.mxu0 %v2037_v31 }
 0x4b5   : > { %1824 = vmatprep.subr.bf16.mxu0 %v2385_v25 }
 0x4b8   : > { %1825 = vmatpush3.bf16.msra.mxu0 %v2038_v32 }
 0x4bb   : > { %1827 = vmatmul.mubr.bf16.vlgmr.msra.gmra.mxu0 %v2039_v33 }
 0x526   : > { %v1180_v52 = vpop.xlane.xlu1 %1179 }
 0x52a   : > { %v1182_v55 = vpop.xlane.xlu1 %1181 }
 0x57b   : > { %v1071_v42 = vpop.f32.mrf.mxu0 }
 0x57c   : > { %v2857_v44 = vmul.f32 %v1716_v41, %v1071_v42 }
 0x57d   : > { %v1828_v45 = vpop.f32.mrf.mxu0 }
 0x57e   : > { %v1171_v46 = vsel %vm2853_vm10, %v2857_v44, -1e+30  ;;  %v1110_v12 = vmul.f32 30.0, %v2857_v44 }
 0x57f   : > { %1175 = vmax.xlane.f32.xlu0 %v1171_v46  ;;  %v1074_v47 = vpop.f32.mrf.mxu0 }
 0x580   : > { %v2862_v48 = vmul.f32 %v1716_v41, %v1074_v47 }
 0x581   : > { %v1829_v49 = vpop.f32.mrf.mxu0 }
 0x582   : > { %v1172_v50 = vsel %vm2853_vm10, %v2862_v48, -1e+30  ;;  %v1111_v13 = vmul.f32 30.0, %v2862_v48 }
 0x583   : > { %1177 = vmax.xlane.f32.xlu0 %v1172_v50 }
 0x608   : > { %v1176_v53 = vpop.xlane.xlu0 %1175 }
 0x609   : > { %v1183_v54 = vmax.f32 %v1176_v53, %v1180_v52 }
 0x60b   : > { %vm1190_vm11 = vcmp.eq.f32.partialorder %v1171_v46, %v1183_v54  ;;  %vm1194_vm12 = vcmp.eq.f32.partialorder %v1173_v34, %v1183_v54  ;;  %v1188_v2 = vsel %vm1185_vm15, %v1183_v54, -1e+30 }
 0x60c   : > { %v1178_v56 = vpop.xlane.xlu0 %1177  ;;  %v1192_v57 = vsel %vm1190_vm11, -1e+30, %v1171_v46  ;;  %v1196_v59 = vsel %vm1194_vm12, -1e+30, %v1173_v34 }
 0x60d   : > { %v1184_v58 = vmax.f32 %v1178_v56, %v1182_v55  ;;  %1198 = vmax.xlane.f32.xlu0 %v1192_v57 }
 0x60f   : > { %vm1191_vm13 = vcmp.eq.f32.partialorder %v1172_v50, %v1184_v58  ;;  %vm1195_vm14 = vcmp.eq.f32.partialorder %v1174_v35, %v1184_v58  ;;  %v1189_v8 = vsel %vm1185_vm15, %v1184_v58, -1e+30 }
 0x610   : > { %v1193_v60 = vsel %vm1191_vm13, -1e+30, %v1172_v50  ;;  %v1197_v61 = vsel %vm1195_vm14, -1e+30, %v1174_v35  ;;  %vm1154_vm13 = vcmask 7168   ;;  %vm1231_vm14 = vcmp.eq.s32.totalorder %v2845_v37, 2 }
 0x611   : > { %1202 = vmax.xlane.f32.xlu0 %v1196_v59  ;;  %1200 = vmax.xlane.f32.xlu1 %v1193_v60 }
 0x615   : > { %1204 = vmax.xlane.f32.xlu1 %v1197_v61 }
 0x626   : > { %1098 = vperm.xlu1 %2030, %v2795_v6  }
 0x627   : > { %1095 = vperm.xlu0 %2029, %v2793_v5  }
 0x696   : > { %v1199_v62 = vpop.xlane.xlu0 %1198 }
 0x69a   : > { %v1201_v63 = vpop.xlane.xlu1 %1200  ;;  %v1203_v0 = vpop.xlane.xlu0 %1202 }
 0x69b   : > { %v1206_v1 = vmax.f32 %v1199_v62, %v1203_v0 }
 0x69d   : > { %v1211_v3 = vsel %vm1208_vm0, %v1206_v1, %v1188_v2  ;;  %vm1213_vm8 = vcmp.eq.f32.partialorder %v1192_v57, %v1206_v1  ;;  %vm1217_vm9 = vcmp.eq.f32.partialorder %v1196_v59, %v1206_v1 }
 0x69e   : > { %v1205_v4 = vpop.xlane.xlu1 %1204  ;;  %v1215_v16 = vsel %vm1213_vm8, -1e+30, %v1192_v57  ;;  %v1219_v17 = vsel %vm1217_vm9, -1e+30, %v1196_v59 }
 0x69f   : > { %v1207_v7 = vmax.f32 %v1201_v63, %v1205_v4 }
 0x6a1   : > { %v1212_v9 = vsel %vm1208_vm0, %v1207_v7, %v1189_v8  ;;  %vm1214_vm11 = vcmp.eq.f32.partialorder %v1193_v60, %v1207_v7  ;;  %vm1218_vm12 = vcmp.eq.f32.partialorder %v1197_v61, %v1207_v7  ;;  %v1128_v7 = vld [vmem:[#allocation4] sm:$0xff] }
 0x6a2   : > { %v2879_v10 = vpop.permute.xlu1 %1098  ;;  %v2881_v11 = vpop.permute.xlu0 %1095  ;;  %v1216_v18 = vsel %vm1214_vm11, -1e+30, %v1193_v60  ;;  %v1220_v19 = vsel %vm1218_vm12, -1e+30, %v1197_v61 }
 0x6a3   : > { %vm1101_vm1 = vcmp.eq.s32.totalorder %v2848_v39, %v2879_v10  ;;  %vm1100_vm2 = vcmp.eq.s32.totalorder %v2848_v39, %v2881_v11  ;;  %v1129_v39 = vld [vmem:[#allocation4 + $0x8] sm:$0xff] }
 0x6a4   : > { %vm1107_vm4 = vmxor %vm1101_vm1, %vm2388_vm3 }
 0x6a5   : > { %vm1106_vm5 = vmxor %vm1100_vm2, %vm2388_vm3 }
 0x6a6   : > { %vm1108_vm6 = vmand %vm2853_vm10, %vm1106_vm5 }
 0x6a7   : > { %v1112_v14 = vsel %vm1108_vm6, %v1110_v12, -1e+30  ;;  %vm1109_vm7 = vmand %vm2853_vm10, %vm1107_vm4 }
 0x6a8   : > { %1116 = vmax.xlane.f32.xlu1 %v1112_v14  ;;  %v1113_v15 = vsel %vm1109_vm7, %v1111_v13, -1e+30  ;;  %vm1254_vm7 = vcmp.eq.s32.totalorder %v2845_v37, 3  ;;  %vm1104_vm12 = vmand %vm2853_vm10, %vm1100_vm2 }
 0x6a9   : > { %1118 = vmax.xlane.f32.xlu0 %v1113_v15  ;;  %v1161_v0 = vsel %vm1104_vm12, %v2857_v44, 0.0 }
 0x6ac   : > { %1221 = vmax.xlane.f32.xlu1 %v1215_v16 }
 0x6b0   : > { %1225 = vmax.xlane.f32.xlu1 %v1219_v17 }
 0x6b4   : > { %1223 = vmax.xlane.f32.xlu1 %v1216_v18 }
 0x6b8   : > { %1227 = vmax.xlane.f32.xlu1 %v1220_v19 }
 0x731   : > { %v1117_v22 = vpop.xlane.xlu1 %1116 }
 0x732   : > { %v2904_v23 = vmax.f32 %v2899_v20, %v1117_v22  ;;  %v1119_v24 = vpop.xlane.xlu0 %1118 }
 0x733   : > { %v2907_v25 = vmax.f32 %v2901_v21, %v1119_v24 }
 0x734   : > { %v1122_v26 = vsub.f32 %v2899_v20, %v2904_v23  ;;  %1157 = vst.msk [vmem:[#allocation3] sm:$0xff] %vm1154_vm13, %v2904_v23  ;;  %1134 = vperm.xlu1 %2030, %v2904_v23   ;;  %v1160_v23 = vld [vmem:[#allocation5 + $0x8] sm:$0xff] }
 0x735   : > { %v1123_v27 = vsub.f32 %v2901_v21, %v2907_v25  ;;  %1158 = vst.msk [vmem:[#allocation3 + $0x8] sm:$0xff] %vm1154_vm13, %v2907_v25  ;;  %1139 = vperm.xlu0 %2029, %v2907_v25   ;;  %v1222_v28 = vpop.xlane.xlu1 %1221 }
 0x737   : > { %v1126_v44 = vmul.f32 1.442695, %v1123_v27 }
 0x739   : > { %v1226_v29 = vpop.xlane.xlu1 %1225 }
 0x73a   : > { %v1229_v30 = vmax.f32 %v1222_v28, %v1226_v29 }
 0x73c   : > { %v1234_v31 = vsel %vm1231_vm14, %v1229_v30, %v1211_v3  ;;  %vm1236_vm4 = vcmp.eq.f32.partialorder %v1215_v16, %v1229_v30  ;;  %vm1240_vm5 = vcmp.eq.f32.partialorder %v1219_v17, %v1229_v30  ;;  %v1124_v3 = vmul.f32 1.442695, %v1122_v26 }
 0x73d   : > { %v1224_v32 = vpop.xlane.xlu1 %1223  ;;  %v1238_v38 = vsel %vm1236_vm4, -1e+30, %v1215_v16  ;;  %v1242_v40 = vsel %vm1240_vm5, -1e+30, %v1219_v17  ;;  %vm1105_vm4 = vmand %vm2853_vm10, %vm1101_vm1  ;;  %vm1277_vm10 = vcmp.eq.s32.totalorder %v2845_v37, 4  ;;  %v1159_v17 = vld [vmem:[#allocation5] sm:$0xff] }
 0x73e   : > { %v1162_v2 = vsel %vm1105_vm4, %v2862_v48, 0.0 }
 0x741   : > { %v1228_v33 = vpop.xlane.xlu1 %1227 }
 0x742   : > { %v1230_v34 = vmax.f32 %v1224_v32, %v1228_v33 }
 0x744   : > { %v1235_v35 = vsel %vm1231_vm14, %v1230_v34, %v1212_v9  ;;  %vm1237_vm3 = vcmp.eq.f32.partialorder %v1216_v18, %v1230_v34  ;;  %vm1241_vm6 = vcmp.eq.f32.partialorder %v1220_v19, %v1230_v34 }
 0x745   : > { %v1239_v36 = vsel %vm1237_vm3, -1e+30, %v1216_v18  ;;  %v1243_v41 = vsel %vm1241_vm6, -1e+30, %v1220_v19 }
 0x754   : > { %1246 = vmax.xlane.f32.xlu0 %v1239_v36 }
 0x758   : > { %1244 = vmax.xlane.f32.xlu1 %v1238_v38 }
 0x75c   : > { %1248 = vmax.xlane.f32.xlu1 %v1242_v40 }
 0x760   : > { %1250 = vmax.xlane.f32.xlu1 %v1243_v41 }
 0x7af   : > { %v1135_v42 = vpop.permute.xlu1 %1134 }
 0x7b0   : > { %v1142_v45 = vsub.f32 %v1112_v14, %v1135_v42  ;;  %v1140_v46 = vpop.permute.xlu0 %1139 }
 0x7b1   : > { %v1143_v47 = vsub.f32 %v1113_v15, %v1140_v46 }
 0x7b2   : > { %v1144_v49 = vmul.f32 1.442695, %v1142_v45 }
 0x7b3   : > { %v1146_v50 = vmul.f32 1.442695, %v1143_v47 }
 0x7b4   : > { %2040 = vpow2.f32 %v1144_v49 }
 0x7b5   : > { %2042 = vpow2.f32 %v1146_v50 }
 0x7b6   : > { %2044 = vpow2.f32 %v1124_v3 }
 0x7b7   : > { %2046 = vpow2.f32 %v1126_v44 }
 0x7c1   : > { %v2041_v51 = vpop.eup %2040 }
 0x7c2   : > { %v2043_v52 = vpop.eup %2042  ;;  %1148 = vadd.xlane.f32.xlu0 %v2041_v51 }
 0x7c3   : > { %1150 = vadd.xlane.f32.xlu1 %v2043_v52  ;;  %v2045_v4 = vpop.eup %2044 }
 0x7c4   : > { %v2047_v8 = vpop.eup %2046  ;;  %v1130_v9 = vmul.f32 %v2045_v4, %v1128_v7 }
 0x7c5   : > { %v1131_v43 = vmul.f32 %v2047_v8, %v1129_v39 }
 0x7dd   : > { %v1247_v57 = vpop.xlane.xlu0 %1246 }
 0x7e1   : > { %v1245_v53 = vpop.xlane.xlu1 %1244 }
 0x7e5   : > { %v1249_v54 = vpop.xlane.xlu1 %1248 }
 0x7e6   : > { %v1252_v55 = vmax.f32 %v1245_v53, %v1249_v54 }
 0x7e8   : > { %v1257_v56 = vsel %vm1254_vm7, %v1252_v55, %v1234_v31  ;;  %vm1259_vm8 = vcmp.eq.f32.partialorder %v1238_v38, %v1252_v55  ;;  %vm1263_vm9 = vcmp.eq.f32.partialorder %v1242_v40, %v1252_v55 }
 0x7e9   : > { %v1251_v58 = vpop.xlane.xlu1 %1250  ;;  %v1261_v59 = vsel %vm1259_vm8, -1e+30, %v1238_v38  ;;  %v1265_v62 = vsel %vm1263_vm9, -1e+30, %v1242_v40 }
 0x7ea   : > { %v1253_v60 = vmax.f32 %v1247_v57, %v1251_v58  ;;  %1267 = vmax.xlane.f32.xlu0 %v1261_v59 }
 0x7ec   : > { %v1258_v61 = vsel %vm1254_vm7, %v1253_v60, %v1235_v35  ;;  %vm1260_vm11 = vcmp.eq.f32.partialorder %v1239_v36, %v1253_v60  ;;  %vm1264_vm3 = vcmp.eq.f32.partialorder %v1243_v41, %v1253_v60 }
 0x7ed   : > { %v1262_v63 = vsel %vm1260_vm11, -1e+30, %v1239_v36  ;;  %v1266_v1 = vsel %vm1264_vm3, -1e+30, %v1243_v41 }
 0x7ee   : > { %1271 = vmax.xlane.f32.xlu0 %v1265_v62  ;;  %1269 = vmax.xlane.f32.xlu1 %v1262_v63 }
 0x7f2   : > { %1163 = vadd.xlane.f32.xlu0 %v1161_v0  ;;  %1273 = vmax.xlane.f32.xlu1 %v1266_v1 }
 0x7f6   : > { %1165 = vadd.xlane.f32.xlu1 %v1162_v2 }
 0x84b   : > { %v1149_v10 = vpop.xlane.xlu0 %1148 }
 0x84c   : > { %v1151_v11 = vpop.xlane.xlu1 %1150  ;;  %v1152_v48 = vadd.f32 %v1149_v10, %v1130_v9 }
 0x84d   : > { %v1153_v12 = vadd.f32 %v1151_v11, %v1131_v43 }
 0x84e   : > { %1155 = vst.msk [vmem:[#allocation4] sm:$0xff] %vm1154_vm13, %v1152_v48 }
 0x84f   : > { %1156 = vst.msk [vmem:[#allocation4 + $0x8] sm:$0xff] %vm1154_vm13, %v1153_v12 }
 0x873   : > { %v1268_v13 = vpop.xlane.xlu0 %1267 }
 0x877   : > { %v1270_v14 = vpop.xlane.xlu1 %1269  ;;  %v1272_v15 = vpop.xlane.xlu0 %1271 }
 0x878   : > { %v1275_v16 = vmax.f32 %v1268_v13, %v1272_v15 }
 0x87a   : > { %v1280_v18 = vsel %vm1277_vm10, %v1275_v16, %v1257_v56 }
 0x87b   : > { %1282 = vst [vmem:[#allocation7] sm:$0xff] %v1280_v18  ;;  %v1274_v19 = vpop.xlane.xlu1 %1273  ;;  %v1164_v20 = vpop.xlane.xlu0 %1163 }
 0x87c   : > { %v1276_v21 = vmax.f32 %v1270_v14, %v1274_v19  ;;  %v1167_v22 = vadd.f32 %v1164_v20, %v1159_v17 }
 0x87e   : > { %v1281_v24 = vsel %vm1277_vm10, %v1276_v21, %v1258_v61  ;;  %1169 = vst.msk [vmem:[#allocation5] sm:$0xff] %vm1154_vm13, %v1167_v22  ;;  %1286 = sbr.rel (%p1718_p0) target bundleno = 2585 (0xa19), region = 80 }
 0x87f   : > { %1283 = vst [vmem:[#allocation7 + $0x8] sm:$0xff] %v1281_v24  ;;  %v1166_v25 = vpop.xlane.xlu1 %1165 }
 0x880   : > { %v1168_v26 = vadd.f32 %v1166_v25, %v1160_v23 }
 0x882   : > { %1170 = vst.msk [vmem:[#allocation5 + $0x8] sm:$0xff] %vm1154_vm13, %v1168_v26 }
 0x883   : > { %v2389_v28 = vmov 0   ;;  %vm1287_vm1 = vcmp.ge.s32.totalorder %v2793_v5, 0  ;;  %vm1288_vm2 = vcmp.ge.s32.totalorder %v2795_v6, 0  ;;  %v1383_v34 = vld [vmem:[#allocation6] sm:$0xff]  ;;  %v2390_v35 = vmov 0.0   ;;  %v1325_v54 = vld [vmem:[#allocation3] sm:$0xff] }
 0x884   : > { %2048 = vset.pattern.permute.xlu0 %v2389_v28  ;;  %2049 = vset.pattern.permute.xlu1 %v2389_v28  ;;  %v1725_v36 = vsel %vm1287_vm1, 1.0, %v2390_v35  ;;  %v1726_v38 = vsel %vm1288_vm2, 1.0, %v2390_v35  ;;  %v1327_v58 = vld [vmem:[#allocation4] sm:$0xff]  ;;  %v1349_v2 = vld [vmem:[#allocation7] sm:$0xff]  ;;  %v1384_v39 = vld [vmem:[#allocation6 + $0x8] sm:$0xff] }
 0x885   : > { %v1289_v27 = vld [vmem:[#allocation5] sm:$0xff]  ;;  %v2050_v40 = vpack.i.bf16 %v1726_v38, %v1725_v36  ;;  %v1326_v22 = vld [vmem:[#allocation3 + $0x8] sm:$0xff]  ;;  %v1328_v26 = vld [vmem:[#allocation4 + $0x8] sm:$0xff] }
 0x886   : > { %v1291_v29 = vmul.f32 %v1289_v27, %v1289_v27  ;;  %1353 = vperm.xlu0 %2048, %v1289_v27   ;;  %v1313_v46 = vmul.f32 0.9553365, %v1289_v27  ;;  %v1719_v51 = vadd.f32 -0.08865606, %v1289_v27  ;;  %vm1319_vm6 = vcmp.gt.f32.partialorder %v1289_v27, -0.9553365 }
 0x887   : > { %v1350_v4 = vld [vmem:[#allocation7 + $0x8] sm:$0xff] }
 0x888   : > { %v1293_v30 = vsub.f32 1.0, %v1291_v29 }
 0x889   : > { %v2953_v31 = vld [vmem:[#allocation5 + $0x8] sm:$0xff] }
 0x88a   : > { %v1295_v32 = vmax.f32 %v1293_v30, 0.0  ;;  %1358 = vperm.xlu0 %2048, %v2953_v31   ;;  %v1292_v9 = vmul.f32 %v2953_v31, %v2953_v31  ;;  %v1314_v16 = vmul.f32 0.9553365, %v2953_v31  ;;  %v1720_v19 = vadd.f32 -0.08865606, %v2953_v31 }
 0x88b   : > { %vm1320_vm3 = vcmp.gt.f32.partialorder %v2953_v31, -0.9553365 }
 0x88c   : > { %v1297_v33 = vmin.f32 %v1295_v32, 1.0  ;;  %v1294_v43 = vsub.f32 1.0, %v1292_v9 }
 0x88e   : > { %2060 = vrsqrt.f32 %v1297_v33  ;;  %1387 = vperm.xlu0 %2048, %v1383_v34   ;;  %vm1301_vm13 = vcmp.eq.f32.partialorder %v1297_v33, inf  ;;  %v1304_v42 = vand.u32 2147483648, %v1297_v33  ;;  %vm1303_vm5 = vcmp.eq.f32.partialorder %v1297_v33, 0.0 }
 0x88f   : > { %v1296_v10 = vmax.f32 %v1294_v43, 0.0 }
 0x891   : > { %v1298_v11 = vmin.f32 %v1296_v10, 1.0 }
 0x892   : > { %2051 = vperm.xlu0 %2048, %v2050_v40  }
 0x893   : > { %vm1308_vm11 = vcmp.eq.f32.partialorder %v1298_v11, inf  ;;  %v1311_v13 = vand.u32 2147483648, %v1298_v11  ;;  %vm1310_vm12 = vcmp.eq.f32.partialorder %v1298_v11, 0.0 }
 0x89b   : > { %v2061_v41 = vpop.eup %2060 }
 0x89c   : > { %v1300_v45 = vmul.f32 %v2061_v41, %v1297_v33 }
 0x89e   : > { %v1302_v47 = vsel %vm1301_vm13, %v1297_v33, %v1300_v45 }
 0x89f   : > { %v1305_v49 = vsel %vm1303_vm5, %v1304_v42, %v1302_v47 }
 0x8a0   : > { %v1315_v50 = vmul.f32 0.29552022, %v1305_v49 }
 0x8a2   : > { %v1317_v52 = vsub.f32 %v1313_v46, %v1315_v50 }
 0x8a4   : > { %v1323_v53 = vsel %vm1319_vm6, %v1317_v52, %v1719_v51 }
 0x8a5   : > { %v1329_v55 = vmul.f32 30.0, %v1323_v53 }
 0x8a7   : > { %v1331_v56 = vsub.f32 %v1329_v55, %v1325_v54 }
 0x8a9   : > { %v1333_v57 = vmul.f32 1.442695, %v1331_v56 }
 0x8ab   : > { %2062 = vpow2.f32 %v1333_v57 }
 0x8b8   : > { %v2063_v59 = vpop.eup %2062 }
 0x8b9   : > { %v1337_v60 = vadd.f32 %v2063_v59, %v1327_v58 }
 0x8bb   : > { %2064 = vlog2.f32 %v1337_v60 }
 0x8bc   : > { %2066 = vrsqrt.f32 %v1298_v11 }
 0x8c8   : > { %v2065_v61 = vpop.eup %2064 }
 0x8c9   : > { %v1340_v62 = vmul.f32 0.6931472, %v2065_v61  ;;  %v2067_v48 = vpop.eup %2066 }
 0x8ca   : > { %v1307_v12 = vmul.f32 %v2067_v48, %v1298_v11 }
 0x8cb   : > { %v1343_v63 = vadd.f32 %v1340_v62, %v1325_v54 }
 0x8cc   : > { %v1309_v14 = vsel %vm1308_vm11, %v1298_v11, %v1307_v12 }
 0x8cd   : > { %v1345_v0 = vsub.f32 %v1343_v63, %v1329_v55  ;;  %v1312_v15 = vsel %vm1310_vm12, %v1311_v13, %v1309_v14 }
 0x8ce   : > { %v1316_v17 = vmul.f32 0.29552022, %v1312_v15 }
 0x8cf   : > { %v1347_v1 = vsel %vm1287_vm1, %v1345_v0, 0.0 }
 0x8d0   : > { %1423 = vperm.xlu0 %2048, %v1347_v1   ;;  %v1318_v18 = vsub.f32 %v1314_v16, %v1316_v17 }
 0x8d2   : > { %v1324_v20 = vsel %vm1320_vm3, %v1318_v18, %v1720_v19 }
 0x8d3   : > { %v1330_v21 = vmul.f32 30.0, %v1324_v20 }
 0x8d5   : > { %v1332_v23 = vsub.f32 %v1330_v21, %v1326_v22 }
 0x8d7   : > { %v1335_v24 = vmul.f32 1.442695, %v1332_v23 }
 0x8d9   : > { %2068 = vpow2.f32 %v1335_v24 }
 0x8e6   : > { %v2069_v25 = vpop.eup %2068 }
 0x8e7   : > { %v1338_v27 = vadd.f32 %v2069_v25, %v1328_v26 }
 0x8e9   : > { %2070 = vlog2.f32 %v1338_v27 }
 0x8f6   : > { %v2071_v28 = vpop.eup %2070 }
 0x8f7   : > { %v1342_v29 = vmul.f32 0.6931472, %v2071_v28 }
 0x8f9   : > { %v1344_v32 = vadd.f32 %v1342_v29, %v1326_v22 }
 0x8fb   : > { %v1346_v40 = vsub.f32 %v1344_v32, %v1330_v21 }
 0x8fd   : > { %v1348_v42 = vsel %vm1288_vm2, %v1346_v40, 0.0 }
 0x901   : > { %v1354_v3 = vpop.permute.xlu0 %1353 }
 0x902   : > { %vm1361_vm8 = vcmp.gt.f32.partialorder %v1349_v2, %v1354_v3 }
 0x903   : > { %v1721_v44 = vsel %vm1361_vm8, 1.0, %v2390_v35 }
 0x904   : > { %1367 = vadd.xlane.f32.xlu1 %v1721_v44 }
 0x905   : > { %v1359_v7 = vpop.permute.xlu0 %1358 }
 0x906   : > { %vm1362_vm9 = vcmp.gt.f32.partialorder %v1350_v4, %v1359_v7 }
 0x907   : > { %v1722_v8 = vsel %vm1362_vm9, 1.0, %v2390_v35 }
 0x908   : > { %1369 = vadd.xlane.f32.xlu1 %v1722_v8 }
 0x909   : > { %v1388_v45 = vpop.permute.xlu0 %1387 }
 0x90a   : > { %v1395_v52 = vsel %vm1254_vm7, %v1388_v45, 0.0 }
 0x90d   : > { %v2052_v46 = vpop.permute.xlu0 %2051 }
 0x90e   : > { %v2054_v50 = vunpack.i.h.bf16 %v2052_v46 }
 0x919   : > { %1392 = vperm.xlu1 %2049, %v1384_v39  }
 0x94b   : > { %v1424_v47 = vpop.permute.xlu0 %1423 }
 0x98d   : > { %v1368_v30 = vpop.xlane.xlu1 %1367 }
 0x98e   : > { %vm1371_vm4 = vcmp.lt.f32.partialorder %v1368_v30, 5.0 }
 0x98f   : > { %v1723_v33 = vsel %vm1371_vm4, 1.0, %v2390_v35 }
 0x990   : > { %v1377_v36 = vsel %vm1287_vm1, %v1723_v33, 0.0 }
 0x991   : > { %v1370_v34 = vpop.xlane.xlu1 %1369 }
 0x992   : > { %vm1372_vm10 = vcmp.lt.f32.partialorder %v1370_v34, 5.0 }
 0x993   : > { %v1724_v31 = vsel %vm1372_vm10, 1.0, %v2390_v35  ;;  %v2053_v35 = vunpack.i.l.bf16 %v2052_v46 }
 0x994   : > { %v1378_v38 = vsel %vm1288_vm2, %v1724_v31, 0.0 }
 0x995   : > { %v2055_v41 = vpack.i.bf16 %v1378_v38, %v1377_v36  ;;  %v1393_v49 = vpop.permute.xlu1 %1392  ;;  %v1407_v6 = vsel %vm1231_vm14, %v2053_v35, %v1395_v52 }
 0x996   : > { %v1396_v5 = vsel %vm1254_vm7, %v1393_v49, 0.0 }
 0x997   : > { %2056 = vperm.xlu0 %2048, %v2055_v41   ;;  %v1408_v55 = vsel %vm1231_vm14, %v2054_v50, %v1396_v5 }
 0x99b   : > { %1428 = vperm.xlu0 %2048, %v1348_v42  }
 0xa12   : > { %v2057_v51 = vpop.permute.xlu0 %2056 }
 0xa13   : > { %v2059_v53 = vunpack.i.h.bf16 %v2057_v51  ;;  %v2058_v54 = vunpack.i.l.bf16 %v2057_v51 }
 0xa15   : > { %v1419_v56 = vsel %vm1208_vm0, %v2058_v54, %v1407_v6  ;;  %v1420_v57 = vsel %vm1208_vm0, %v2059_v53, %v1408_v55 }
 0xa16   : > { %v1431_v58 = vsel %vm1185_vm15, %v1424_v47, %v1419_v56  ;;  %v1429_v59 = vpop.permute.xlu0 %1428 }
 0xa17   : > { %1433 = vst [vmem:[%s2802_s2] sm:$0xff] %v1431_v58  ;;  %v1432_v60 = vsel %vm1185_vm15, %v1429_v59, %v1420_v57 }
 0xa18   : > { %1434 = vst [vmem:[%s2802_s2 + $0x8] sm:$0xff] %v1432_v60 }
 0xa19 PF: > { %s3187_s21 = sld [smem:[#allocation41_spill]]  ;;  %s1452_s0 = sshll.u32 %s2802_s2, 4  ;;  %s3015_s0 = int_to_ptr.vmem [resolvable:$true] %s1452_s0 }
 0xa1a   : > { %s3189_s11 = sld [smem:[#allocation38_spill]]  ;;  %s2391_s1 = smov [#allocation20]  }
 0xa1b   : > { %s1468_s5 = sshll.u32 %s2391_s1, 4  ;;  %p3190_p2 = scmp.eq.s32.totalorder %s2539_s23, 2  ;;  %s1469_s5 = int_to_ptr.vmem [resolvable:$true] %s1468_s5 }
 0xa1c   : > { %s2202_s14 = scalar_lea.vmem %s1469_s5, 256  ;;  %p2209_p12 = scmp.lt.s32.totalorder %s1469_s5, %s1469_s5 }
 0xa1d   : > { %p2203_p5 = scmp.ne.s32.totalorder %s1469_s5, %s2202_s14  ;;  %p2210_p3 = scmp.lt.s32.totalorder %s2202_s14, %s2202_s14 }
 0xa1f   : > { %p3188_p13 = scmp.ne.s32.totalorder %s3187_s21, 0  ;;  %p2204_p1 = pnand %p2203_p5, %p3190_p2 }
 0xa20   : > { %p2211_p11 = por %p2210_p3, %p2209_p12 }
 0xa21   : > { %s1844_s4 = scalar_select %p3188_p13, [#allocation10], [#allocation25] }
 0xa22   : > { %s3232_s11 = smov (!%p3188_p13, %s3189_s11), 0  ;;  %p2205_p7 = pneg %p2204_p1 }
 0xa23   : > { %s1443_s8 = sld [smem:[%s1844_s4 + %s3232_s11]] }
 0xa24   : > { %p2212_p8 = pnand %p2211_p11, %p2205_p7 }
 0xa26   : > { %2215 = shalt.err (!%p2212_p8)
}
 0xa27   : > { %s2392_s13 = smov 128   ;;  %s2393_s15 = smov 8  }
 0xa28   : > { %p3191_p10 = pmov %p3190_p2  ;;  %s3192_s27 = sld [smem:[#allocation54_spill]] }
 0xa29   : > { %s1737_s10 = sshll.u32 %s1443_s8, 8  ;;  %s3193_s26 = sld [smem:[#allocation53_spill]] }
 0xa2a   : > { %s1436_s3 = scalar_lea.sflag [#allocation15], %s574_s19  ;;  %s2226_s28 = scalar_lea.vmem %s3015_s0, 256 }
 0xa2b   : > { %p2227_p6 = scmp.ne.s32.totalorder %s3015_s0, %s2226_s28  ;;  %s2394_s7 = smov [#allocation19]  }
 0xa2c   : > { %s2230_s11 = sshll.u32 %s2394_s7, 4  ;;  %s2231_s11 = int_to_ptr.vmem [resolvable:$false] %s2230_s11 }
 0xa2d   : > { %p2228_p4 = pnand %p2227_p6, %p3188_p13  ;;  %s2232_s4 = scalar_lea.vmem %s2231_s11, 512 }
 0xa2e   : > { %1848 = dma.vmem_to_hbm [thread:$0]  (%p3191_p10), %s1469_s5, 256, %s3192_s27, [#allocation21], %s2392_s13, %s2392_s13, %s2393_s15  }
 0xa2f   : > { %s3020_s6 = scalar_lea.hbm %s3193_s26, %s1737_s10  ;;  %p2229_p9 = pneg %p2228_p4 }
 0xa30   : > { %p2233_p0 = scmp.lt.s32.totalorder %s3015_s0, %s2231_s11  ;;  %p2234_p5 = scmp.lt.s32.totalorder %s2232_s4, %s2226_s28 }
 0xa32   : > { %p2235_p2 = por %p2234_p5, %p2233_p0 }
 0xa34   : > { %p2236_p1 = pnand %p2235_p2, %p2229_p9 }
 0xa36   : > { %2239 = shalt.err (!%p2236_p1)
}
 0xa37   : > { %s2240_s8 = scalar_lea.hbm %s3020_s6, 256  ;;  %s2244_s5 = scalar_lea.hbm %s3193_s26, 768 }
 0xa38   : > { %p2241_p7 = scmp.ne.s32.totalorder %s3020_s6, %s2240_s8  ;;  %p2245_p11 = scmp.lt.s32.totalorder %s3020_s6, %s3193_s26 }
 0xa39   : > { %p2246_p8 = scmp.lt.s32.totalorder %s2244_s5, %s2240_s8 }
 0xa3a   : > { %p2242_p12 = pnand %p2241_p7, %p3188_p13 }
 0xa3b   : > { %p2247_p10 = por %p2246_p8, %p2245_p11 }
 0xa3c   : > { %p2243_p3 = pneg %p2242_p12 }
 0xa3e   : > { %p2248_p6 = pnand %p2247_p10, %p2243_p3 }
 0xa40   : > { %2251 = shalt.err (!%p2248_p6)
}
 0xa41   : > { %1846 = dma.vmem_to_hbm [thread:$0]  (%p3188_p13), %s3015_s0, 256, %s3020_s6, %s1436_s3, %s2392_s13, %s2392_s13, %s2393_s15  }
 0xa42   : > { %p3194_p4 = scmp.eq.s32.totalorder %s2539_s23, 2 }
 0xa44   : > { %2315 = dma.done.wait (%p3194_p4), [#allocation21], 256   ;;  %p3195_p9 = pmov %p3194_p4 }
 0xa46   : > { %2317 = vsyncadd (%p3195_p9), [#allocation21], 4294967040 }
 0xa47 PF: > { %s3196_s29 = sld [smem:[#allocation35_spill]]  ;;  %p1878_p0 = scmp.ge.s32.totalorder %s2368_s22, 2 }
 0xa48   : > { %s3197_s27 = sld [smem:[#allocation42_spill]] }
 0xa4d   : > { %s1487_s10 = sand.u32 1, %s3196_s29  }
 0xa4e   : > { %p3198_p5 = scmp.ne.s32.totalorder %s3197_s27, 0  ;;  %s1488_s21 = scalar_lea.sflag [#allocation15], %s1487_s10 }
 0xa50   : > { %p1870_p2 = pnand %p1878_p0, %p3198_p5 }
 0xa52   : > { %p1871_p1 = pneg %p1870_p2 }
 0xa54   : > { %2319 = dma.done.wait (%p1871_p1), %s1488_s21, 256  }
 0xa55   : > { %2321 = vsyncadd (%p1871_p1), %s1488_s21, 4294967040  ;;  %s53_s22 = sadd.s32 1, %s2368_s22   ;;  %s3199_s0 = sld [smem:[#allocation36_spill]] }
 0xa56   : > { %p50_p13 = scmp.ge.s32.totalorder %s53_s22, 5   ;;  %s3200_s15 = sld [smem:[#allocation43_spill]] }
 0xa57   : > { %s3201_s23 = sld [smem:[#allocation37_spill]]  ;;  %s3205_s3 = smov %s2328_s30 }
 0xa58   : > { %s3202_s21 = sld [smem:[#allocation44_spill]]  ;;  %s3207_s16 = smov %s2340_s17 }
 0xa59   : > { %s3203_s13 = sld [smem:[#allocation39_spill]]  ;;  %s3208_s17 = smov %s2344_s18 }
 0xa5a   : > { %s3204_s1 = sld [smem:[#allocation40_spill]]  ;;  %s3209_s18 = smov %s2689_s12 }
 0xa5b   : > { %s3206_s30 = smov %s3199_s0  ;;  %s3210_s19 = smov %s2352_s20 }
 0xa5c   :  { %52 = sbr.rel (!%p50_p13) target bundleno = 61 (0x3d), region = 154 }
 0xa5d   : > { %s3211_s20 = smov %s3201_s23 }
 0xa5f   : > { %s3212_s0 = smov %s3203_s13 }
 0xa61   :  { %1493 = vsyncpa [#allocation14], 1 }
 0xa62   :  { %1495 = vsyncpa [#allocation14 + $0x1], 1 }
 0xa63   :  { %1496 = vsyncpa [#allocation17], 1 }
 0xa64   :  { %1498 = vsyncpa [#allocation17 + $0x1], 1 }
 0xa65   :  { %1499 = vsyncpa [#allocation15], 1 }
 0xa66   :  { %1501 = vsyncpa [#allocation15 + $0x1], 1 }
 0xa67   :  { %1502 = vsyncpa [#allocation21], 1 }

</bundles_post_ra>
